<compile_context>
chip_gen: v6e
topology: v6e:2x2x1
jax: 0.10.0
libtpu: 0.0.40
codegen_flags: <defaults>
</compile_context>

<pallas_src>
import functools

import jax
import jax.numpy as jnp
from jax.experimental import pallas as pl
from jax.experimental.pallas import tpu as pltpu


def _round_up(x, mult):
    return ((x + mult - 1) // mult) * mult


def _tpu_generation():
    """Best-effort TPU generation from device_kind; conservative default."""
    try:
        kind = jax.devices()[0].device_kind.lower()
    except Exception:
        return 6
    for g in (7, 6, 5, 4, 3, 2):
        if "v{}".format(g) in kind:
            return g
    return 6


def _choose_tm(n_pad, d_pad, mm_size, ew_size, budget, gen):
    """Largest row-tile dividing n_pad whose live working set fits the generation budget."""
    # Full transposed matrix (worst case double-buffered) + labels.
    fixed = 2 * n_pad * d_pad * mm_size + 4 * n_pad * 4
    # Per-row stripe cost: sim (f32) + ~3-4 ew-dtype temporaries + row tile + output block.
    per_row = n_pad * (4 + 4 * ew_size) + 2 * d_pad * mm_size + 2 * 128 * 4 + 16
    start = 512 if gen >= 6 else 128      # TM=128 matches v5e's 4x128^2 MXU; bigger on v6e/v7x.
    for t in (512, 256, 128, 64, 32, 16, 8):
        if t > start or t > n_pad or n_pad % t != 0:
            continue
        if fixed + t * per_row <= budget:
            return t
    return 8  # n_pad is a multiple of 128, so 8 always divides it.


def _circle_loss_kernel(e_row_ref, e_t_ref, lbl_col_ref, lbl_row_ref, out_ref,
                        *, m, gamma, n_valid, tm, ew_dtype):
    i = pl.program_id(0)

    # ---- (TM, N_pad) cosine-similarity stripe: plain (M,K)x(K,N) on the MXU, f32 accumulation ----
    sim = jnp.dot(e_row_ref[...], e_t_ref[...], preferred_element_type=jnp.float32)
    tm_blk, n_pad = sim.shape

    # ---- pair masks from (TM,1) x (1,N) broadcasts (no full int32 (TM,N) temporaries) ----
    lbl_c = lbl_col_ref[...]                                     # (TM, 1) int32
    lbl_r = lbl_row_ref[...]                                     # (1, N_pad) int32
    same = lbl_c == lbl_r

    row_ids = jax.lax.broadcasted_iota(jnp.int32, (tm_blk, 1), 0) + i * tm
    col_ids = jax.lax.broadcasted_iota(jnp.int32, (1, n_pad), 1)
    not_diag = row_ids != col_ids
    col_valid = col_ids < n_valid
    row_valid = row_ids < n_valid

    pos_mask = jnp.logical_and(jnp.logical_and(same, not_diag), col_valid)
    neg_mask = jnp.logical_and(jnp.logical_not(same), col_valid)

    # ---- circle weighting in ew_dtype (bf16 on v6e/v7x when enabled, else f32) ----
    s = sim.astype(ew_dtype)
    big_neg = jnp.asarray(-1e30, ew_dtype)
    pos_val = (-gamma) * jnp.maximum((1.0 + m) - s, 0.0) * (s - (1.0 - m))
    neg_val = gamma * jnp.maximum(s + m, 0.0) * (s - m)
    # Merged stripe: pos/neg masks are disjoint -> one array, one exp pass below.
    x = jnp.where(pos_mask, pos_val, jnp.where(neg_mask, neg_val, big_neg))

    # ---- fused masked logsumexp: two masked row-maxes, ONE exp, two masked row-sums (f32 acc) ----
    m_p = jnp.max(jnp.where(pos_mask, x, big_neg), axis=1, keepdims=True)   # (TM,1) ew_dtype
    m_n = jnp.max(jnp.where(neg_mask, x, big_neg), axis=1, keepdims=True)
    shift = jnp.where(pos_mask, m_p, m_n)                                   # (TM,N) ew_dtype
    e_x = jnp.exp(x - shift)                                                # single exp pass
    sum_p = jnp.sum(jnp.where(pos_mask, e_x, jnp.asarray(0.0, ew_dtype)),
                    axis=1, keepdims=True, dtype=jnp.float32)
    sum_n = jnp.sum(jnp.where(neg_mask, e_x, jnp.asarray(0.0, ew_dtype)),
                    axis=1, keepdims=True, dtype=jnp.float32)

    m_p32 = m_p.astype(jnp.float32)
    m_n32 = m_n.astype(jnp.float32)
    any_p = m_p32 > -1e29                   # derived from the masked max, no extra count
    any_n = m_n32 > -1e29

    lse_p = m_p32 + jnp.log(sum_p)          # -inf when a row has no positives (masked below)
    lse_n = m_n32 + jnp.log(sum_n)
    z = lse_p + lse_n
    # log1p keeps softplus(z) > 0 down to exp-underflow, matching torch's losses>0 count semantics.
    softplus = jnp.maximum(z, 0.0) + jnp.log1p(jnp.exp(-jnp.abs(z)))

    valid = jnp.logical_and(jnp.logical_and(any_p, any_n), row_valid)
    losses = jnp.where(valid, softplus, 0.0)                                # (TM,1) f32

    # Per-tile partial output (lane-dense, unmasked stores); host reduces sum / nonzero count.
    out_ref[...] = jnp.broadcast_to(losses, (tm_blk, 128))


def circle_loss(embeddings, labels, *, m=0.4, gamma=80.0, use_bf16=False):
    """Pallas CircleLoss. embeddings: (N, D) float, labels: (N,) int.

    use_bf16=False (default) keeps everything f32 (closest match to the PyTorch f32 reference).
    use_bf16=True uses bf16 MXU inputs and, on v6e/v7x, a bf16 elementwise/exp path (~3e-2 rel tol).
    """
    n, d = embeddings.shape
    n_pad = _round_up(n, 128)
    d_pad = _round_up(d, 128)
    gen = _tpu_generation()

    mm_dtype = jnp.bfloat16 if use_bf16 else jnp.float32
    ew_dtype = jnp.bfloat16 if (use_bf16 and gen >= 6) else jnp.float32
    mm_size = 2 if mm_dtype == jnp.bfloat16 else 4
    ew_size = 2 if ew_dtype == jnp.bfloat16 else 4

    # L2-normalize once in f32 (rsqrt); the full matrix is reused as the RHS on every grid step.
    e = embeddings.astype(jnp.float32)
    inv = jax.lax.rsqrt(jnp.maximum(jnp.sum(e * e, axis=-1, keepdims=True), 1e-24))
    e = (e * inv)
    e = jnp.pad(e, ((0, n_pad - n), (0, d_pad - d))).astype(mm_dtype)
    e_t = e.T                                # one-time XLA transpose; kernel does (TM,K)x(K,N)

    lbl = jnp.pad(labels.astype(jnp.int32), (0, n_pad - n), constant_values=-1)
    lbl_col = lbl.reshape(n_pad, 1)
    lbl_row = lbl.reshape(1, n_pad)

    budget = (40 << 20) if gen >= 7 else (80 << 20)      # v7x: 64 MiB/TC; v5e/v6e: 128 MiB
    tm = _choose_tm(n_pad, d_pad, mm_size, ew_size, budget, gen)
    grid_n = n_pad // tm

    est_live = (tm * n_pad * (4 + 4 * ew_size)
                + 2 * n_pad * d_pad * mm_size
                + 2 * tm * d_pad * mm_size
                + 2 * tm * 128 * 4
                + 8 * n_pad * 4)
    hard_cap = (56 << 20) if gen >= 7 else (100 << 20)
    vmem_limit = int(min(hard_cap, max(32 << 20, est_live + (8 << 20))))

    kernel = functools.partial(
        _circle_loss_kernel, m=float(m), gamma=float(gamma), n_valid=n, tm=tm, ew_dtype=ew_dtype)

    def make_call(single_buffer_const):
        # Grid-constant blocks (full transposed matrix, label row) don't need double buffering.
        const_kw = {"pipeline_mode": pl.Buffered(1)} if single_buffer_const else {}
        return pl.pallas_call(
            kernel,
            out_shape=jax.ShapeDtypeStruct((n_pad, 128), jnp.float32),
            grid_spec=pltpu.PrefetchScalarGridSpec(
                num_scalar_prefetch=0,
                grid=(grid_n,),
                in_specs=[
                    pl.BlockSpec((tm, d_pad), lambda i: (i, 0)),              # row tile (LHS)
                    pl.BlockSpec((d_pad, n_pad), lambda i: (0, 0), **const_kw),  # full E^T (RHS)
                    pl.BlockSpec((tm, 1), lambda i: (i, 0)),                  # label column tile
                    pl.BlockSpec((1, n_pad), lambda i: (0, 0), **const_kw),   # full label row
                ],
                out_specs=pl.BlockSpec((tm, 128), lambda i: (i, 0)),          # per-tile losses
            ),
            compiler_params=pltpu.CompilerParams(
                dimension_semantics=("parallel",),        # no cross-step state -> megacore-safe
                vmem_limit_bytes=vmem_limit,
            ),
            cost_estimate=pl.CostEstimate(
                flops=2 * n_pad * n_pad * d_pad + 16 * n_pad * n_pad,
                transcendentals=n_pad * n_pad + 4 * n_pad,
                bytes_accessed=2 * n_pad * d_pad * mm_size + 8 * n_pad + n_pad * 128 * 4,
            ),
        )

    try:
        per = make_call(True)(e, e_t, lbl_col, lbl_row)
    except Exception:
        # pl.Buffered(1) single-buffering isn't available in every JAX release; fall back to the
        # default (double-buffered) pipeline -- numerically identical, slightly more VMEM.
        per = make_call(False)(e, e_t, lbl_col, lbl_row)

    # AvgNonZeroReducer on the host side (tiny (N,) reduction).
    losses = per[:n, 0]
    total = jnp.sum(losses)
    nnz = jnp.sum((losses > 0.0).astype(jnp.float32))
    return jnp.where(nnz > 0.0, total / jnp.maximum(nnz, 1.0), jnp.float32(0.0))


def _circle_loss_ref(embeddings, labels, *, m=0.4, gamma=80.0):
    """Pure-JAX reference mirroring pytorch-metric-learning CircleLoss."""
    e = embeddings.astype(jnp.float32)
    e = e / jnp.maximum(jnp.linalg.norm(e, axis=-1, keepdims=True), 1e-12)
    sim = e @ e.T
    n = sim.shape[0]
    same = labels[:, None] == labels[None, :]
    diag = jnp.eye(n, dtype=bool)
    pos_mask = same & ~diag
    neg_mask = ~same
    pos_val = -gamma * jnp.maximum((1.0 + m) - sim, 0.0) * (sim - (1.0 - m))
    neg_val = gamma * jnp.maximum(sim - (-m), 0.0) * (sim - m)
    new_mat = jnp.where(pos_mask, pos_val, jnp.where(neg_mask, neg_val, 0.0))

    def mlse(mask):
        x = jnp.where(mask, new_mat, -jnp.inf)
        has = jnp.any(mask, axis=1)
        lse = jax.scipy.special.logsumexp(x, axis=1)
        return jnp.where(has, lse, 0.0), has

    lp, hp = mlse(pos_mask)
    ln, hn = mlse(neg_mask)
    losses = jnp.where(hp & hn, jax.nn.softplus(lp + ln), 0.0)
    nnz = jnp.sum(losses > 0)
    return jnp.where(nnz > 0, jnp.sum(losses) / jnp.maximum(nnz, 1), 0.0)


if __name__ == "__main__":
    key = jax.random.PRNGKey(0)
    k_emb, k_lbl, k_emb2, k_lbl2 = jax.random.split(key, 4)

    # Small case consistent with the module (params_dict['feat_dim'] = 64).
    N, FEAT_DIM = 32, 64
    inputs = jax.random.normal(k_emb, (N, FEAT_DIM), dtype=jnp.float32)
    targets = jax.random.randint(k_lbl, (N,), 0, 4, dtype=jnp.int32)
    ref = _circle_loss_ref(inputs, targets, m=0.4, gamma=80.0)

    loss_f32 = circle_loss(inputs, targets, m=0.4, gamma=80.0, use_bf16=False)
    jax.block_until_ready(loss_f32)
    assert jnp.isfinite(loss_f32), "kernel produced non-finite loss"
    assert jnp.allclose(loss_f32, ref, rtol=1e-3, atol=1e-3), (loss_f32, ref)

    loss_bf16 = circle_loss(inputs, targets, m=0.4, gamma=80.0, use_bf16=True)
    jax.block_until_ready(loss_bf16)
    assert jnp.isfinite(loss_bf16), "kernel produced non-finite loss (bf16)"
    assert jnp.allclose(loss_bf16, ref, rtol=3e-2, atol=3e-2), (loss_bf16, ref)

    # Larger ragged case exercising row tiling + N/D padding + validity masks (N_pad=384, grid=3).
    N2 = 300
    inputs2 = jax.random.normal(k_emb2, (N2, FEAT_DIM), dtype=jnp.float32)
    targets2 = jax.random.randint(k_lbl2, (N2,), 0, 10, dtype=jnp.int32)
    ref2 = _circle_loss_ref(inputs2, targets2, m=0.4, gamma=80.0)

    loss2_f32 = circle_loss(inputs2, targets2, m=0.4, gamma=80.0, use_bf16=False)
    jax.block_until_ready(loss2_f32)
    assert jnp.allclose(loss2_f32, ref2, rtol=1e-3, atol=1e-3), (loss2_f32, ref2)

    loss2_bf16 = circle_loss(inputs2, targets2, m=0.4, gamma=80.0, use_bf16=True)
    jax.block_until_ready(loss2_bf16)
    assert jnp.allclose(loss2_bf16, ref2, rtol=3e-2, atol=3e-2), (loss2_bf16, ref2)

    print("KERNEL_OK")
</pallas_src>

<mosaic_0001>
module attributes {stable_mosaic.version = 11 : i64} {
  func.func @_circle_loss_kernel(%arg0: i32, %arg1: memref<128x128xf32, #tpu.memory_space<vmem>>, %arg2: memref<128x128xf32, #tpu.memory_space<vmem>>, %arg3: memref<128x1xi32, #tpu.memory_space<vmem>>, %arg4: memref<1x128xi32, #tpu.memory_space<vmem>>, %arg5: memref<128x128xf32, #tpu.memory_space<vmem>>) attributes {dimension_semantics = [#tpu.dimension_semantics<parallel>], iteration_bounds = array<i64: 1>, scalar_prefetch = 0 : i64, scratch_operands = 0 : i64, tpu.core_type = #tpu.core_type<tc>, window_params = [{transform_indices = @transform_0, window_bounds = array<i64: 128, 128>}, {pipeline_mode = #tpu.pipeline_mode<synchronous>, transform_indices = @transform_1, window_bounds = array<i64: 128, 128>}, {transform_indices = @transform_2, window_bounds = array<i64: 128, 1>}, {pipeline_mode = #tpu.pipeline_mode<synchronous>, transform_indices = @transform_3, window_bounds = array<i64: 1, 128>}, {transform_indices = @transform_4, window_bounds = array<i64: 128, 128>}]} {
    %c0 = arith.constant 0 : index
    %c0_0 = arith.constant 0 : index
    %0 = vector.load %arg1[%c0, %c0_0] : memref<128x128xf32, #tpu.memory_space<vmem>>, vector<128x128xf32>
    %c0_1 = arith.constant 0 : index
    %c0_2 = arith.constant 0 : index
    %1 = vector.load %arg2[%c0_1, %c0_2] : memref<128x128xf32, #tpu.memory_space<vmem>>, vector<128x128xf32>
    %cst = arith.constant dense<0.000000e+00> : vector<128x128xf32>
    %2 = tpu.matmul %0, %1, %cst {dimension_numbers = #tpu.dot_dimension_numbers<[1], [0], [0], [1], [0, 0, 1, 1], [], []>} : vector<128x128xf32>, vector<128x128xf32>, vector<128x128xf32> -> vector<128x128xf32>
    %c0_3 = arith.constant 0 : index
    %c0_4 = arith.constant 0 : index
    %3 = vector.load %arg3[%c0_3, %c0_4] : memref<128x1xi32, #tpu.memory_space<vmem>>, vector<128x1xi32>
    %c0_5 = arith.constant 0 : index
    %c0_6 = arith.constant 0 : index
    %4 = vector.load %arg4[%c0_5, %c0_6] : memref<1x128xi32, #tpu.memory_space<vmem>>, vector<1x128xi32>
    %5 = vector.broadcast %3 : vector<128x1xi32> to vector<128x128xi32>
    %6 = vector.broadcast %4 : vector<1x128xi32> to vector<128x128xi32>
    %7 = arith.cmpi eq, %5, %6 : vector<128x128xi32>
    %8 = tpu.iota {dimensions = array<i32: 0>} : vector<128x1xi32>
    %c128_i32 = arith.constant 128 : i32
    %9 = arith.muli %arg0, %c128_i32 : i32
    %10 = vector.broadcast %9 : i32 to vector<128x1xi32>
    %11 = arith.addi %8, %10 : vector<128x1xi32>
    %12 = tpu.iota {dimensions = array<i32: 1>} : vector<1x128xi32>
    %13 = vector.broadcast %11 : vector<128x1xi32> to vector<128x128xi32>
    %14 = vector.broadcast %12 : vector<1x128xi32> to vector<128x128xi32>
    %15 = arith.cmpi ne, %13, %14 : vector<128x128xi32>
    %c32_i32 = arith.constant 32 : i32
    %16 = vector.broadcast %c32_i32 : i32 to vector<1x128xi32>
    %17 = arith.cmpi slt, %12, %16 : vector<1x128xi32>
    %c32_i32_7 = arith.constant 32 : i32
    %18 = vector.broadcast %c32_i32_7 : i32 to vector<128x1xi32>
    %19 = arith.cmpi slt, %11, %18 : vector<128x1xi32>
    %20 = arith.andi %7, %15 : vector<128x128xi1>
    %21 = vector.broadcast %17 : vector<1x128xi1> to vector<128x128xi1>
    %22 = arith.andi %20, %21 : vector<128x128xi1>
    %cst_8 = arith.constant dense<true> : vector<128x128xi1>
    %23 = arith.xori %7, %cst_8 : vector<128x128xi1>
    %24 = vector.broadcast %17 : vector<1x128xi1> to vector<128x128xi1>
    %25 = arith.andi %23, %24 : vector<128x128xi1>
    %cst_9 = arith.constant 1.400000e+00 : f32
    %26 = vector.broadcast %cst_9 : f32 to vector<128x128xf32>
    %27 = arith.subf %26, %2 : vector<128x128xf32>
    %cst_10 = arith.constant 0.000000e+00 : f32
    %28 = vector.broadcast %cst_10 : f32 to vector<128x128xf32>
    %29 = arith.maximumf %27, %28 : vector<128x128xf32>
    %cst_11 = arith.constant -8.000000e+01 : f32
    %30 = vector.broadcast %cst_11 : f32 to vector<128x128xf32>
    %31 = arith.mulf %30, %29 : vector<128x128xf32>
    %cst_12 = arith.constant 6.000000e-01 : f32
    %32 = vector.broadcast %cst_12 : f32 to vector<128x128xf32>
    %33 = arith.subf %2, %32 : vector<128x128xf32>
    %34 = arith.mulf %31, %33 : vector<128x128xf32>
    %cst_13 = arith.constant 4.000000e-01 : f32
    %35 = vector.broadcast %cst_13 : f32 to vector<128x128xf32>
    %36 = arith.addf %2, %35 : vector<128x128xf32>
    %cst_14 = arith.constant 0.000000e+00 : f32
    %37 = vector.broadcast %cst_14 : f32 to vector<128x128xf32>
    %38 = arith.maximumf %36, %37 : vector<128x128xf32>
    %cst_15 = arith.constant 8.000000e+01 : f32
    %39 = vector.broadcast %cst_15 : f32 to vector<128x128xf32>
    %40 = arith.mulf %39, %38 : vector<128x128xf32>
    %cst_16 = arith.constant 4.000000e-01 : f32
    %41 = vector.broadcast %cst_16 : f32 to vector<128x128xf32>
    %42 = arith.subf %2, %41 : vector<128x128xf32>
    %43 = arith.mulf %40, %42 : vector<128x128xf32>
    %cst_17 = arith.constant -1.000000e+30 : f32
    %44 = vector.broadcast %cst_17 : f32 to vector<128x128xf32>
    %45 = arith.select %25, %43, %44 : vector<128x128xi1>, vector<128x128xf32>
    %46 = arith.select %22, %34, %45 : vector<128x128xi1>, vector<128x128xf32>
    %cst_18 = arith.constant -1.000000e+30 : f32
    %47 = vector.broadcast %cst_18 : f32 to vector<128x128xf32>
    %48 = arith.select %22, %46, %47 : vector<128x128xi1>, vector<128x128xf32>
    %cst_19 = arith.constant dense<0xFF800000> : vector<128xf32>
    %49 = vector.multi_reduction <maximumf>, %48, %cst_19 [1] : vector<128x128xf32> to vector<128xf32>
    %50 = vector.shape_cast %49 : vector<128xf32> to vector<128x1xf32>
    %cst_20 = arith.constant -1.000000e+30 : f32
    %51 = vector.broadcast %cst_20 : f32 to vector<128x128xf32>
    %52 = arith.select %25, %46, %51 : vector<128x128xi1>, vector<128x128xf32>
    %cst_21 = arith.constant dense<0xFF800000> : vector<128xf32>
    %53 = vector.multi_reduction <maximumf>, %52, %cst_21 [1] : vector<128x128xf32> to vector<128xf32>
    %54 = vector.shape_cast %53 : vector<128xf32> to vector<128x1xf32>
    %55 = vector.shape_cast %50 : vector<128x1xf32> to vector<128x1xf32>
    %56 = vector.broadcast %55 : vector<128x1xf32> to vector<128x128xf32>
    %57 = vector.shape_cast %54 : vector<128x1xf32> to vector<128x1xf32>
    %58 = vector.broadcast %57 : vector<128x1xf32> to vector<128x128xf32>
    %59 = arith.select %22, %56, %58 : vector<128x128xi1>, vector<128x128xf32>
    %60 = arith.subf %46, %59 : vector<128x128xf32>
    %61 = math.exp %60 : vector<128x128xf32>
    %cst_22 = arith.constant 0.000000e+00 : f32
    %62 = vector.broadcast %cst_22 : f32 to vector<128x128xf32>
    %63 = arith.select %22, %61, %62 : vector<128x128xi1>, vector<128x128xf32>
    %cst_23 = arith.constant dense<0.000000e+00> : vector<128xf32>
    %64 = vector.multi_reduction <add>, %63, %cst_23 [1] : vector<128x128xf32> to vector<128xf32>
    %65 = vector.shape_cast %64 : vector<128xf32> to vector<128x1xf32>
    %cst_24 = arith.constant 0.000000e+00 : f32
    %66 = vector.broadcast %cst_24 : f32 to vector<128x128xf32>
    %67 = arith.select %25, %61, %66 : vector<128x128xi1>, vector<128x128xf32>
    %cst_25 = arith.constant dense<0.000000e+00> : vector<128xf32>
    %68 = vector.multi_reduction <add>, %67, %cst_25 [1] : vector<128x128xf32> to vector<128xf32>
    %69 = vector.shape_cast %68 : vector<128xf32> to vector<128x1xf32>
    %cst_26 = arith.constant -1.000000e+29 : f32
    %70 = vector.broadcast %cst_26 : f32 to vector<128x1xf32>
    %71 = arith.cmpf ogt, %50, %70 : vector<128x1xf32>
    %cst_27 = arith.constant -1.000000e+29 : f32
    %72 = vector.broadcast %cst_27 : f32 to vector<128x1xf32>
    %73 = arith.cmpf ogt, %54, %72 : vector<128x1xf32>
    %74 = math.log %65 : vector<128x1xf32>
    %75 = arith.addf %50, %74 : vector<128x1xf32>
    %76 = math.log %69 : vector<128x1xf32>
    %77 = arith.addf %54, %76 : vector<128x1xf32>
    %78 = arith.addf %75, %77 : vector<128x1xf32>
    %cst_28 = arith.constant 0.000000e+00 : f32
    %79 = vector.broadcast %cst_28 : f32 to vector<128x1xf32>
    %80 = arith.maximumf %78, %79 : vector<128x1xf32>
    %81 = math.absf %78 : vector<128x1xf32>
    %cst_29 = arith.constant 0.000000e+00 : f32
    %82 = vector.broadcast %cst_29 : f32 to vector<128x1xf32>
    %83 = arith.subf %82, %81 : vector<128x1xf32>
    %84 = math.exp %83 : vector<128x1xf32>
    %85 = math.log1p %84 : vector<128x1xf32>
    %86 = arith.addf %80, %85 : vector<128x1xf32>
    %87 = arith.andi %71, %73 : vector<128x1xi1>
    %88 = arith.andi %87, %19 : vector<128x1xi1>
    %cst_30 = arith.constant 0.000000e+00 : f32
    %89 = vector.broadcast %cst_30 : f32 to vector<128x1xf32>
    %90 = arith.select %88, %86, %89 : vector<128x1xi1>, vector<128x1xf32>
    %91 = vector.shape_cast %90 : vector<128x1xf32> to vector<128x1xf32>
    %92 = vector.broadcast %91 : vector<128x1xf32> to vector<128x128xf32>
    %c0_31 = arith.constant 0 : index
    %c0_32 = arith.constant 0 : index
    %93 = vector.load %arg5[%c0_31, %c0_32] : memref<128x128xf32, #tpu.memory_space<vmem>>, vector<128x128xf32>
    tpu.vector_store %arg5[%c0_31, %c0_32], %92 {strides = array<i32>} : memref<128x128xf32, #tpu.memory_space<vmem>>, vector<128x128xf32>,
    return
  }
  func.func @transform_0(%arg0: i32) -> (i32, i32) {
    %c0_i32 = arith.constant 0 : i32
    %c0_i32_0 = arith.constant 0 : i32
    return %arg0, %c0_i32 : i32, i32
  }
  func.func @transform_1(%arg0: i32) -> (i32, i32) {
    %c0_i32 = arith.constant 0 : i32
    %c0_i32_0 = arith.constant 0 : i32
    %c0_i32_1 = arith.constant 0 : i32
    return %c0_i32, %c0_i32_0 : i32, i32
  }
  func.func @transform_2(%arg0: i32) -> (i32, i32) {
    %c0_i32 = arith.constant 0 : i32
    %c0_i32_0 = arith.constant 0 : i32
    return %arg0, %c0_i32 : i32, i32
  }
  func.func @transform_3(%arg0: i32) -> (i32, i32) {
    %c0_i32 = arith.constant 0 : i32
    %c0_i32_0 = arith.constant 0 : i32
    %c0_i32_1 = arith.constant 0 : i32
    return %c0_i32, %c0_i32_0 : i32, i32
  }
  func.func @transform_4(%arg0: i32) -> (i32, i32) {
    %c0_i32 = arith.constant 0 : i32
    %c0_i32_0 = arith.constant 0 : i32
    return %arg0, %c0_i32 : i32, i32
  }
}

module attributes {stable_mosaic.version = 11 : i64} {
  func.func @_circle_loss_kernel(%arg0: i32, %arg1: memref<128x128xf32, #tpu.memory_space<vmem>>, %arg2: memref<128x128xf32, #tpu.memory_space<vmem>>, %arg3: memref<128x1xi32, #tpu.memory_space<vmem>>, %arg4: memref<1x128xi32, #tpu.memory_space<vmem>>, %arg5: memref<128x128xf32, #tpu.memory_space<vmem>>) attributes {dimension_semantics = [#tpu.dimension_semantics<parallel>], iteration_bounds = array<i64: 1>, scalar_prefetch = 0 : i64, scratch_operands = 0 : i64, tpu.core_type = #tpu.core_type<tc>, window_params = [{transform_indices = @transform_0, window_bounds = array<i64: 128, 128>}, {pipeline_mode = #tpu.pipeline_mode<synchronous>, transform_indices = @transform_1, window_bounds = array<i64: 128, 128>}, {transform_indices = @transform_2, window_bounds = array<i64: 128, 1>}, {pipeline_mode = #tpu.pipeline_mode<synchronous>, transform_indices = @transform_3, window_bounds = array<i64: 1, 128>}, {transform_indices = @transform_4, window_bounds = array<i64: 128, 128>}]} {
    %c0 = arith.constant 0 : index
    %c0_0 = arith.constant 0 : index
    %0 = vector.load %arg1[%c0, %c0_0] : memref<128x128xf32, #tpu.memory_space<vmem>>, vector<128x128xf32>
    %c0_1 = arith.constant 0 : index
    %c0_2 = arith.constant 0 : index
    %1 = vector.load %arg2[%c0_1, %c0_2] : memref<128x128xf32, #tpu.memory_space<vmem>>, vector<128x128xf32>
    %cst = arith.constant dense<0.000000e+00> : vector<128x128xf32>
    %2 = tpu.matmul %0, %1, %cst {dimension_numbers = #tpu.dot_dimension_numbers<[1], [0], [0], [1], [0, 0, 1, 1], [], []>} : vector<128x128xf32>, vector<128x128xf32>, vector<128x128xf32> -> vector<128x128xf32>
    %c0_3 = arith.constant 0 : index
    %c0_4 = arith.constant 0 : index
    %3 = vector.load %arg3[%c0_3, %c0_4] : memref<128x1xi32, #tpu.memory_space<vmem>>, vector<128x1xi32>
    %c0_5 = arith.constant 0 : index
    %c0_6 = arith.constant 0 : index
    %4 = vector.load %arg4[%c0_5, %c0_6] : memref<1x128xi32, #tpu.memory_space<vmem>>, vector<1x128xi32>
    %5 = vector.broadcast %3 : vector<128x1xi32> to vector<128x128xi32>
    %6 = vector.broadcast %4 : vector<1x128xi32> to vector<128x128xi32>
    %7 = arith.cmpi eq, %5, %6 : vector<128x128xi32>
    %8 = tpu.iota {dimensions = array<i32: 0>} : vector<128x1xi32>
    %c128_i32 = arith.constant 128 : i32
    %9 = arith.muli %arg0, %c128_i32 : i32
    %10 = vector.broadcast %9 : i32 to vector<128x1xi32>
    %11 = arith.addi %8, %10 : vector<128x1xi32>
    %12 = tpu.iota {dimensions = array<i32: 1>} : vector<1x128xi32>
    %13 = vector.broadcast %11 : vector<128x1xi32> to vector<128x128xi32>
    %14 = vector.broadcast %12 : vector<1x128xi32> to vector<128x128xi32>
    %15 = arith.cmpi ne, %13, %14 : vector<128x128xi32>
    %c32_i32 = arith.constant 32 : i32
    %16 = vector.broadcast %c32_i32 : i32 to vector<1x128xi32>
    %17 = arith.cmpi slt, %12, %16 : vector<1x128xi32>
    %c32_i32_7 = arith.constant 32 : i32
    %18 = vector.broadcast %c32_i32_7 : i32 to vector<128x1xi32>
    %19 = arith.cmpi slt, %11, %18 : vector<128x1xi32>
    %20 = arith.andi %7, %15 : vector<128x128xi1>
    %21 = vector.broadcast %17 : vector<1x128xi1> to vector<128x128xi1>
    %22 = arith.andi %20, %21 : vector<128x128xi1>
    %cst_8 = arith.constant dense<true> : vector<128x128xi1>
    %23 = arith.xori %7, %cst_8 : vector<128x128xi1>
    %24 = vector.broadcast %17 : vector<1x128xi1> to vector<128x128xi1>
    %25 = arith.andi %23, %24 : vector<128x128xi1>
    %cst_9 = arith.constant 1.400000e+00 : f32
    %26 = vector.broadcast %cst_9 : f32 to vector<128x128xf32>
    %27 = arith.subf %26, %2 : vector<128x128xf32>
    %cst_10 = arith.constant 0.000000e+00 : f32
    %28 = vector.broadcast %cst_10 : f32 to vector<128x128xf32>
    %29 = arith.maximumf %27, %28 : vector<128x128xf32>
    %cst_11 = arith.constant -8.000000e+01 : f32
    %30 = vector.broadcast %cst_11 : f32 to vector<128x128xf32>
    %31 = arith.mulf %30, %29 : vector<128x128xf32>
    %cst_12 = arith.constant 6.000000e-01 : f32
    %32 = vector.broadcast %cst_12 : f32 to vector<128x128xf32>
    %33 = arith.subf %2, %32 : vector<128x128xf32>
    %34 = arith.mulf %31, %33 : vector<128x128xf32>
    %cst_13 = arith.constant 4.000000e-01 : f32
    %35 = vector.broadcast %cst_13 : f32 to vector<128x128xf32>
    %36 = arith.addf %2, %35 : vector<128x128xf32>
    %cst_14 = arith.constant 0.000000e+00 : f32
    %37 = vector.broadcast %cst_14 : f32 to vector<128x128xf32>
    %38 = arith.maximumf %36, %37 : vector<128x128xf32>
    %cst_15 = arith.constant 8.000000e+01 : f32
    %39 = vector.broadcast %cst_15 : f32 to vector<128x128xf32>
    %40 = arith.mulf %39, %38 : vector<128x128xf32>
    %cst_16 = arith.constant 4.000000e-01 : f32
    %41 = vector.broadcast %cst_16 : f32 to vector<128x128xf32>
    %42 = arith.subf %2, %41 : vector<128x128xf32>
    %43 = arith.mulf %40, %42 : vector<128x128xf32>
    %cst_17 = arith.constant -1.000000e+30 : f32
    %44 = vector.broadcast %cst_17 : f32 to vector<128x128xf32>
    %45 = arith.select %25, %43, %44 : vector<128x128xi1>, vector<128x128xf32>
    %46 = arith.select %22, %34, %45 : vector<128x128xi1>, vector<128x128xf32>
    %cst_18 = arith.constant -1.000000e+30 : f32
    %47 = vector.broadcast %cst_18 : f32 to vector<128x128xf32>
    %48 = arith.select %22, %46, %47 : vector<128x128xi1>, vector<128x128xf32>
    %cst_19 = arith.constant dense<0xFF800000> : vector<128xf32>
    %49 = vector.multi_reduction <maximumf>, %48, %cst_19 [1] : vector<128x128xf32> to vector<128xf32>
    %50 = vector.shape_cast %49 : vector<128xf32> to vector<128x1xf32>
    %cst_20 = arith.constant -1.000000e+30 : f32
    %51 = vector.broadcast %cst_20 : f32 to vector<128x128xf32>
    %52 = arith.select %25, %46, %51 : vector<128x128xi1>, vector<128x128xf32>
    %cst_21 = arith.constant dense<0xFF800000> : vector<128xf32>
    %53 = vector.multi_reduction <maximumf>, %52, %cst_21 [1] : vector<128x128xf32> to vector<128xf32>
    %54 = vector.shape_cast %53 : vector<128xf32> to vector<128x1xf32>
    %55 = vector.shape_cast %50 : vector<128x1xf32> to vector<128x1xf32>
    %56 = vector.broadcast %55 : vector<128x1xf32> to vector<128x128xf32>
    %57 = vector.shape_cast %54 : vector<128x1xf32> to vector<128x1xf32>
    %58 = vector.broadcast %57 : vector<128x1xf32> to vector<128x128xf32>
    %59 = arith.select %22, %56, %58 : vector<128x128xi1>, vector<128x128xf32>
    %60 = arith.subf %46, %59 : vector<128x128xf32>
    %61 = math.exp %60 : vector<128x128xf32>
    %cst_22 = arith.constant 0.000000e+00 : f32
    %62 = vector.broadcast %cst_22 : f32 to vector<128x128xf32>
    %63 = arith.select %22, %61, %62 : vector<128x128xi1>, vector<128x128xf32>
    %cst_23 = arith.constant dense<0.000000e+00> : vector<128xf32>
    %64 = vector.multi_reduction <add>, %63, %cst_23 [1] : vector<128x128xf32> to vector<128xf32>
    %65 = vector.shape_cast %64 : vector<128xf32> to vector<128x1xf32>
    %cst_24 = arith.constant 0.000000e+00 : f32
    %66 = vector.broadcast %cst_24 : f32 to vector<128x128xf32>
    %67 = arith.select %25, %61, %66 : vector<128x128xi1>, vector<128x128xf32>
    %cst_25 = arith.constant dense<0.000000e+00> : vector<128xf32>
    %68 = vector.multi_reduction <add>, %67, %cst_25 [1] : vector<128x128xf32> to vector<128xf32>
    %69 = vector.shape_cast %68 : vector<128xf32> to vector<128x1xf32>
    %cst_26 = arith.constant -1.000000e+29 : f32
    %70 = vector.broadcast %cst_26 : f32 to vector<128x1xf32>
    %71 = arith.cmpf ogt, %50, %70 : vector<128x1xf32>
    %cst_27 = arith.constant -1.000000e+29 : f32
    %72 = vector.broadcast %cst_27 : f32 to vector<128x1xf32>
    %73 = arith.cmpf ogt, %54, %72 : vector<128x1xf32>
    %74 = math.log %65 : vector<128x1xf32>
    %75 = arith.addf %50, %74 : vector<128x1xf32>
    %76 = math.log %69 : vector<128x1xf32>
    %77 = arith.addf %54, %76 : vector<128x1xf32>
    %78 = arith.addf %75, %77 : vector<128x1xf32>
    %cst_28 = arith.constant 0.000000e+00 : f32
    %79 = vector.broadcast %cst_28 : f32 to vector<128x1xf32>
    %80 = arith.maximumf %78, %79 : vector<128x1xf32>
    %81 = math.absf %78 : vector<128x1xf32>
    %cst_29 = arith.constant 0.000000e+00 : f32
    %82 = vector.broadcast %cst_29 : f32 to vector<128x1xf32>
    %83 = arith.subf %82, %81 : vector<128x1xf32>
    %84 = math.exp %83 : vector<128x1xf32>
    %85 = math.log1p %84 : vector<128x1xf32>
    %86 = arith.addf %80, %85 : vector<128x1xf32>
    %87 = arith.andi %71, %73 : vector<128x1xi1>
    %88 = arith.andi %87, %19 : vector<128x1xi1>
    %cst_30 = arith.constant 0.000000e+00 : f32
    %89 = vector.broadcast %cst_30 : f32 to vector<128x1xf32>
    %90 = arith.select %88, %86, %89 : vector<128x1xi1>, vector<128x1xf32>
    %91 = vector.shape_cast %90 : vector<128x1xf32> to vector<128x1xf32>
    %92 = vector.broadcast %91 : vector<128x1xf32> to vector<128x128xf32>
    %c0_31 = arith.constant 0 : index
    %c0_32 = arith.constant 0 : index
    %93 = vector.load %arg5[%c0_31, %c0_32] : memref<128x128xf32, #tpu.memory_space<vmem>>, vector<128x128xf32>
    tpu.vector_store %arg5[%c0_31, %c0_32], %92 {strides = array<i32>} : memref<128x128xf32, #tpu.memory_space<vmem>>, vector<128x128xf32>,
    return
  }
  func.func @transform_0(%arg0: i32) -> (i32, i32) {
    %c0_i32 = arith.constant 0 : i32
    %c0_i32_0 = arith.constant 0 : i32
    return %arg0, %c0_i32 : i32, i32
  }
  func.func @transform_1(%arg0: i32) -> (i32, i32) {
    %c0_i32 = arith.constant 0 : i32
    %c0_i32_0 = arith.constant 0 : i32
    %c0_i32_1 = arith.constant 0 : i32
    return %c0_i32, %c0_i32_0 : i32, i32
  }
  func.func @transform_2(%arg0: i32) -> (i32, i32) {
    %c0_i32 = arith.constant 0 : i32
    %c0_i32_0 = arith.constant 0 : i32
    return %arg0, %c0_i32 : i32, i32
  }
  func.func @transform_3(%arg0: i32) -> (i32, i32) {
    %c0_i32 = arith.constant 0 : i32
    %c0_i32_0 = arith.constant 0 : i32
    %c0_i32_1 = arith.constant 0 : i32
    return %c0_i32, %c0_i32_0 : i32, i32
  }
  func.func @transform_4(%arg0: i32) -> (i32, i32) {
    %c0_i32 = arith.constant 0 : i32
    %c0_i32_0 = arith.constant 0 : i32
    return %arg0, %c0_i32 : i32, i32
  }
}

</mosaic_0001>

<bundles_post_ra>
// kernel: tpu_custom_call.1
= control target key start
LH: loop header
LB: loop body
LE: loop exit
PB: predicated region body
PF: predicated region fallthrough
CT: control target
= control target key end

     0   :  { %9 = vsyncpa [#allocation3], 0  ;;  %s1927_s0 = inlined_call_operand.vmem [shape: f32[128,128], index: 0, kind: input, shape index: {}]   ;;  %s1928_s1 = inlined_call_operand.hbm [shape: f32[128,128], index: 1, kind: input, shape index: {}]   ;;  %s1929_s2 = inlined_call_operand.vmem [shape: s32[128,1], index: 2, kind: input, shape index: {}]   ;;  %s1930_s3 = inlined_call_operand.vmem [shape: s32[1,128], index: 3, kind: input, shape index: {}]   ;;  %s1931_s4 = inlined_call_operand.hbm [shape: f32[128,128], index: 4, kind: output, shape index: {}]  }
   0x1   :  { %10 = vsyncpa [#allocation4], 0  ;;  %s1589_s15 = smov [#allocation2]  }
   0x2   :  { %s18_s16 = sshll.u32 %s1589_s15, 4  ;;  %s19_s16 = int_to_ptr.vmem [resolvable:$true] %s18_s16 }
   0x3   :  { %s1553_s17 = scalar_lea.vmem %s19_s16, 2048  ;;  %p1558_p1 = scmp.lt.s32.totalorder %s19_s16, %s19_s16 }
   0x4   :  { %p1554_p0 = scmp.ne.s32.totalorder %s19_s16, %s1553_s17  ;;  %p1559_p2 = scmp.lt.s32.totalorder %s1553_s17, %s1553_s17 }
   0x6   :  { %p1560_p3 = por %p1559_p2, %p1558_p1 }
   0x8   :  { %p1561_p4 = pnand %p1560_p3, %p1554_p0 }
   0xa   :  { %1564 = shalt.err (!%p1561_p4)
}
   0xb   :  { %s1590_s18 = smov 128   ;;  %s1591_s19 = smov 8  }
   0xc   :  { %24 = dma.hbm_to_vmem [thread:$0]  %s1928_s1, 2048, %s19_s16, [#allocation3], %s1590_s18, %s1590_s18, %s1591_s19  }
   0xd   :  { %1585 = dma.done.wait [#allocation3], 2048  }
   0xe   :  { %1586 = vsyncadd [#allocation3], 4294965248  ;;  %v1592_v0 = vmov 0   ;;  %v63_v1 = vld [vmem:[#allocation2 + $0x78] sm:$0xff]  ;;  %v62_v2 = vld [vmem:[#allocation2 + $0x70] sm:$0xff]  ;;  %v294_v25 = vlaneseq  ;;  %vm1593_vm6 = vmmov 1  }
   0xf   :  { %1503 = vset.pattern.permute.xlu0 %v1592_v0  ;;  %1504 = vset.pattern.permute.xlu1 %v1592_v0  ;;  %v61_v3 = vld [vmem:[#allocation2 + $0x68] sm:$0xff]  ;;  %v60_v4 = vld [vmem:[#allocation2 + $0x60] sm:$0xff]  ;;  %v59_v6 = vld [vmem:[#allocation2 + $0x58] sm:$0xff] }
  0x10   :  { %1408 = vmatprep.subr.mxu0 %v63_v1  ;;  %1464 = vmatprep.subr.mxu1 %v63_v1  ;;  %v32_v5 = vld [vmem:[%s1927_s0] sm:$0xff]  ;;  %v211_v8 = vld [vmem:[%s1929_s2 + $0x10] sm:$0xff]  ;;  %v210_v10 = vld [vmem:[%s1929_s2 + $0x8] sm:$0xff]  ;;  %v295_v27 = vshrl.u32 %v294_v25, 7  ;;  %v1651_v28 = vand.u32 127, %v294_v25 }
  0x11   :  { %1409 = vmatpush3.msra.mxu0 %v63_v1  ;;  %1480 = vmatpush3.msra.mxu1 %v63_v1  ;;  %v209_v7 = vld [vmem:[%s1929_s2] sm:$0xff]  ;;  %v58_v9 = vld [vmem:[#allocation2 + $0x50] sm:$0xff]  ;;  %v212_v11 = vld [vmem:[%s1929_s2 + $0x18] sm:$0xff] }
  0x12   :  { %1410 = vmatprep.subr.mxu0 %v62_v2  ;;  %1465 = vmatprep.subr.mxu1 %v62_v2  ;;  %v57_v12 = vld [vmem:[#allocation2 + $0x48] sm:$0xff]  ;;  %v56_v13 = vld [vmem:[#allocation2 + $0x40] sm:$0xff]  ;;  %v55_v14 = vld [vmem:[#allocation2 + $0x38] sm:$0xff]  ;;  %v296_v30 = vadd.s32 8, %v295_v27  ;;  %vm331_vm0 = vcmp.ne.s32.totalorder %v295_v27, %v1651_v28  ;;  %v297_v32 = vadd.s32 16, %v295_v27  ;;  %v1660_v34 = vadd.s32 24, %v295_v27 }
  0x13   :  { %1411 = vmatpush3.msra.mxu0 %v62_v2  ;;  %1481 = vmatpush3.msra.mxu1 %v62_v2  ;;  %v54_v15 = vld [vmem:[#allocation2 + $0x30] sm:$0xff]  ;;  %v53_v16 = vld [vmem:[#allocation2 + $0x28] sm:$0xff]  ;;  %v52_v17 = vld [vmem:[#allocation2 + $0x20] sm:$0xff]  ;;  %vm347_vm4 = vcmp.lt.s32.totalorder %v1651_v28, 32 }
  0x14   :  { %1412 = vmatprep.subr.mxu0 %v61_v3  ;;  %1466 = vmatprep.subr.mxu1 %v61_v3  ;;  %v51_v18 = vld [vmem:[#allocation2 + $0x18] sm:$0xff]  ;;  %v50_v19 = vld [vmem:[#allocation2 + $0x10] sm:$0xff]  ;;  %v49_v20 = vld [vmem:[#allocation2 + $0x8] sm:$0xff]  ;;  %vm332_vm2 = vcmp.ne.s32.totalorder %v296_v30, %v1651_v28  ;;  %vm333_vm8 = vcmp.ne.s32.totalorder %v297_v32, %v1651_v28  ;;  %vm334_vm11 = vcmp.ne.s32.totalorder %v1660_v34, %v1651_v28 }
  0x15   :  { %1413 = vmatpush3.msra.mxu0 %v61_v3  ;;  %1440 = vmatprep.mubr.f32.mxu0 %v32_v5  ;;  %v48_v21 = vld [vmem:[#allocation2] sm:$0xff]  ;;  %v33_v22 = vld [vmem:[%s1927_s0 + $0x8] sm:$0xff]  ;;  %v34_v23 = vld [vmem:[%s1927_s0 + $0x10] sm:$0xff] }
  0x16   :  { %1414 = vmatprep.subr.mxu0 %v60_v4  ;;  %227 = vperm.xlu0 %1503, %v209_v7   ;;  %v35_v24 = vld [vmem:[%s1927_s0 + $0x18] sm:$0xff]  ;;  %v1656_v29 = vld [vmem:[%s1930_s3] ss:$0 sm:$0xff]  ;;  %v41_v46 = vld [vmem:[%s1927_s0 + $0x48] sm:$0xff] }
  0x17   :  { %1415 = vmatpush3.msra.mxu0 %v60_v4  ;;  %233 = vperm.xlu1 %1504, %v211_v8  }
  0x18   :  { %1416 = vmatprep.subr.mxu0 %v59_v6  ;;  %1482 = vmatpush3.msra.mxu1 %v61_v3 }
  0x19   :  { %1417 = vmatpush3.msra.mxu0 %v59_v6  ;;  %1467 = vmatprep.subr.mxu1 %v60_v4 }
  0x1a   :  { %1418 = vmatprep.subr.mxu0 %v58_v9  ;;  %230 = vperm.xlu0 %1503, %v210_v10  }
  0x1b   :  { %1419 = vmatpush3.msra.mxu0 %v58_v9  ;;  %236 = vperm.xlu1 %1504, %v212_v11  }
  0x1c   :  { %1420 = vmatprep.subr.mxu0 %v57_v12  ;;  %1483 = vmatpush3.msra.mxu1 %v60_v4 }
  0x1d   :  { %1421 = vmatpush3.msra.mxu0 %v57_v12  ;;  %1468 = vmatprep.subr.mxu1 %v59_v6 }
  0x1e   :  { %1422 = vmatprep.subr.mxu0 %v56_v13  ;;  %1484 = vmatpush3.msra.mxu1 %v59_v6 }
  0x1f   :  { %1423 = vmatpush3.msra.mxu0 %v56_v13  ;;  %1469 = vmatprep.subr.mxu1 %v58_v9 }
  0x20   :  { %1424 = vmatprep.subr.mxu0 %v55_v14  ;;  %1485 = vmatpush3.msra.mxu1 %v58_v9 }
  0x21   :  { %1425 = vmatpush3.msra.mxu0 %v55_v14  ;;  %1470 = vmatprep.subr.mxu1 %v57_v12 }
  0x22   :  { %1426 = vmatprep.subr.mxu0 %v54_v15  ;;  %1486 = vmatpush3.msra.mxu1 %v57_v12 }
  0x23   :  { %1427 = vmatpush3.msra.mxu0 %v54_v15  ;;  %1471 = vmatprep.subr.mxu1 %v56_v13 }
  0x24   :  { %1428 = vmatprep.subr.mxu0 %v53_v16  ;;  %1487 = vmatpush3.msra.mxu1 %v56_v13 }
  0x25   :  { %1429 = vmatpush3.msra.mxu0 %v53_v16  ;;  %1472 = vmatprep.subr.mxu1 %v55_v14 }
  0x26   :  { %1430 = vmatprep.subr.mxu0 %v52_v17  ;;  %1488 = vmatpush3.msra.mxu1 %v55_v14 }
  0x27   :  { %1431 = vmatpush3.msra.mxu0 %v52_v17  ;;  %1473 = vmatprep.subr.mxu1 %v54_v15 }
  0x28   :  { %1432 = vmatprep.subr.mxu0 %v51_v18  ;;  %1489 = vmatpush3.msra.mxu1 %v54_v15 }
  0x29   :  { %1433 = vmatpush3.msra.mxu0 %v51_v18  ;;  %1474 = vmatprep.subr.mxu1 %v53_v16 }
  0x2a   :  { %1434 = vmatprep.subr.mxu0 %v50_v19  ;;  %1490 = vmatpush3.msra.mxu1 %v53_v16 }
  0x2b   :  { %1435 = vmatpush3.msra.mxu0 %v50_v19  ;;  %1475 = vmatprep.subr.mxu1 %v52_v17 }
  0x2c   :  { %1436 = vmatprep.subr.mxu0 %v49_v20  ;;  %1491 = vmatpush3.msra.mxu1 %v52_v17 }
  0x2d   :  { %1437 = vmatpush3.msra.mxu0 %v49_v20  ;;  %1476 = vmatprep.subr.mxu1 %v51_v18 }
  0x2e   :  { %1438 = vmatprep.subr.mxu0 %v48_v21  ;;  %1492 = vmatpush3.msra.mxu1 %v51_v18 }
  0x2f   :  { %1439 = vmatpush3.msra.mxu0 %v48_v21  ;;  %1477 = vmatprep.subr.mxu1 %v50_v19 }
  0x30   :  { %1441 = vmatmul.mubr.f32.vlgmr.msra.gmra.mxu0 %v33_v22  ;;  %1493 = vmatpush3.msra.mxu1 %v50_v19 }
  0x31   :  { %1443 = vmatprep.mubr.f32.mxu0 %v34_v23  ;;  %1478 = vmatprep.subr.mxu1 %v49_v20 }
  0x32   :  { %1494 = vmatpush3.msra.mxu1 %v49_v20 }
  0x33   :  { %1479 = vmatprep.subr.mxu1 %v48_v21 }
  0x34   :  { %1444 = vmatmul.mubr.f32.gmra.mxu0 %v35_v24  ;;  %1495 = vmatpush3.msra.mxu1 %v48_v21  ;;  %v1594_v24 = vmov 0.0  }
  0x35   :  { %1314 = vst [vmem:[#allocation5 + $0x20] sm:$0xff] %v1594_v24  ;;  %1315 = vst [vmem:[#allocation5 + $0x28] sm:$0xff] %v1594_v24 }
  0x36   :  { %1316 = vst [vmem:[#allocation5 + $0x30] sm:$0xff] %v1594_v24  ;;  %1317 = vst [vmem:[#allocation5 + $0x38] sm:$0xff] %v1594_v24 }
  0x37   :  { %1318 = vst [vmem:[#allocation5 + $0x40] sm:$0xff] %v1594_v24  ;;  %1319 = vst [vmem:[#allocation5 + $0x48] sm:$0xff] %v1594_v24 }
  0x38   :  { %1320 = vst [vmem:[#allocation5 + $0x50] sm:$0xff] %v1594_v24  ;;  %1321 = vst [vmem:[#allocation5 + $0x58] sm:$0xff] %v1594_v24 }
  0x39   :  { %1322 = vst [vmem:[#allocation5 + $0x60] sm:$0xff] %v1594_v24  ;;  %1323 = vst [vmem:[#allocation5 + $0x68] sm:$0xff] %v1594_v24 }
  0x3a   :  { %1324 = vst [vmem:[#allocation5 + $0x70] sm:$0xff] %v1594_v24  ;;  %1325 = vst [vmem:[#allocation5 + $0x78] sm:$0xff] %v1594_v24 }
  0x91   :  { %v228_v26 = vpop.permute.xlu0 %227 }
  0x92   :  { %vm278_vm1 = vcmp.eq.s32.totalorder %v228_v26, %v1656_v29  ;;  %v234_v39 = vpop.permute.xlu1 %233 }
  0x93   :  { %vm1665_vm5 = vmand %vm278_vm1, %vm331_vm0  ;;  %vm280_vm9 = vcmp.eq.s32.totalorder %v234_v39, %v1656_v29 }
  0x94   :  { %vm1670_vm7 = vmxor %vm278_vm1, %vm1593_vm6 }
  0x95   :  { %v231_v31 = vpop.permute.xlu0 %230  ;;  %vm1693_vm13 = vmand %vm1670_vm7, %vm347_vm4 }
  0x96   :  { %vm279_vm3 = vcmp.eq.s32.totalorder %v231_v31, %v1656_v29  ;;  %v237_v2 = vpop.permute.xlu1 %236  ;;  %vm1715_vm0 = vmand %vm280_vm9, %vm333_vm8 }
  0x97   :  { %vm1680_vm10 = vmand %vm279_vm3, %vm332_vm2 }
  0x98   :  { %vm399_vm12 = vmxor %vm279_vm3, %vm1593_vm6  ;;  %vm281_vm3 = vcmp.eq.s32.totalorder %v237_v2, %v1656_v29 }
  0x99   :  { %vm1701_vm14 = vmand %vm1680_vm10, %vm347_vm4 }
  0x9a   :  { %vm1707_vm15 = vmand %vm399_vm12, %vm347_vm4 }
  0x9b   :  { %vm1722_vm1 = vmxor %vm280_vm9, %vm1593_vm6 }
  0x9c   :  { %vm1732_vm2 = vmand %vm1665_vm5, %vm347_vm4 }
  0x9d   :  { %vm1745_vm7 = vmand %vm1715_vm0, %vm347_vm4 }
  0x9e   :  { %vm1757_vm5 = vmand %vm1722_vm1, %vm347_vm4 }
  0x9f   :  { %vm367_vm8 = vmand %vm281_vm3, %vm334_vm11 }
  0xa0   :  { %vm401_vm9 = vmxor %vm281_vm3, %vm1593_vm6 }
  0xa1   :  { %vm1779_vm10 = vmand %vm367_vm8, %vm347_vm4 }
  0xa2   :  { %vm1789_vm6 = vmand %vm401_vm9, %vm347_vm4 }
  0xf0   :  { %v1442_v33 = vpop.f32.mrf.mxu0 }
  0xf1   :  { %v511_v35 = vadd.f32 0.4, %v1442_v33  ;;  %v431_v36 = vsub.f32 1.4, %v1442_v33  ;;  %v1361_v44 = vadd.f32 -0.4, %v1442_v33 }
  0xf2   :  { %v130_v38 = vpop.f32.mrf.mxu0  ;;  %v1345_v51 = vadd.f32 -0.6, %v1442_v33 }
  0xf3   :  { %v527_v40 = vmax.f32 %v511_v35, 0.0  ;;  %v510_v42 = vadd.f32 0.4, %v130_v38  ;;  %v447_v43 = vmax.f32 %v431_v36, 0.0  ;;  %v430_v47 = vsub.f32 1.4, %v130_v38 }
  0xf4   :  { %v1445_v45 = vpop.f32.mrf.mxu0  ;;  %v1360_v53 = vadd.f32 -0.4, %v130_v38  ;;  %v1344_v62 = vadd.f32 -0.6, %v130_v38 }
  0xf5   :  { %v543_v48 = vmul.f32 80.0, %v527_v40  ;;  %v526_v49 = vmax.f32 %v510_v42, 0.0  ;;  %v513_v50 = vadd.f32 0.4, %v1445_v45  ;;  %v463_v55 = vmul.f32 -80.0, %v447_v43 }
  0xf6   :  { %v140_v54 = vpop.f32.mrf.mxu0  ;;  %v446_v56 = vmax.f32 %v430_v47, 0.0  ;;  %v433_v57 = vsub.f32 1.4, %v1445_v45  ;;  %v1347_v23 = vadd.f32 -0.6, %v1445_v45  ;;  %v42_v47 = vld [vmem:[%s1927_s0 + $0x50] sm:$0xff] }
  0xf7   :  { %v542_v58 = vmul.f32 80.0, %v526_v49  ;;  %v529_v59 = vmax.f32 %v513_v50, 0.0  ;;  %v432_v61 = vsub.f32 1.4, %v140_v54  ;;  %v1346_v0 = vadd.f32 -0.6, %v140_v54 }
  0xf8   :  { %v512_v1 = vadd.f32 0.4, %v140_v54  ;;  %v495_v3 = vmul.f32 %v1345_v51, %v463_v55  ;;  %v462_v4 = vmul.f32 -80.0, %v446_v56  ;;  %v1362_v7 = vadd.f32 -0.4, %v140_v54  ;;  %v36_v49 = vld [vmem:[%s1927_s0 + $0x20] sm:$0xff] }
  0xf9   :  { %v448_v6 = vmax.f32 %v432_v61, 0.0  ;;  %v574_v8 = vmul.f32 %v1360_v53, %v542_v58  ;;  %v575_v9 = vmul.f32 %v1361_v44, %v543_v48  ;;  %v449_v14 = vmax.f32 %v433_v57, 0.0  ;;  %v43_v48 = vld [vmem:[%s1927_s0 + $0x58] sm:$0xff]  ;;  %v44_v50 = vld [vmem:[%s1927_s0 + $0x60] sm:$0xff]  ;;  %1446 = vmatprep.mubr.f32.mxu0 %v36_v49  ;;  %v37_v51 = vld [vmem:[%s1927_s0 + $0x28] sm:$0xff] }
  0xfa   :  { %v528_v11 = vmax.f32 %v512_v1, 0.0  ;;  %v623_v12 = vsel %vm1701_vm14, %v495_v3, -1e+30  ;;  %v494_v13 = vmul.f32 %v1344_v62, %v462_v4  ;;  %v545_v31 = vmul.f32 80.0, %v529_v59  ;;  %v45_v53 = vld [vmem:[%s1927_s0 + $0x68] sm:$0xff]  ;;  %v38_v54 = vld [vmem:[%s1927_s0 + $0x30] sm:$0xff]  ;;  %1447 = vmatmul.mubr.f32.gmra.mxu0 %v37_v51 }
  0xfb   :  { %v464_v16 = vmul.f32 -80.0, %v448_v6  ;;  %640 = vmax.xlane.f32.xlu1 %v623_v12  ;;  %v590_v17 = vsel %vm1693_vm13, %v574_v8, -1e+30  ;;  %v591_v18 = vsel %vm1707_vm15, %v575_v9, -1e+30  ;;  %v465_v30 = vmul.f32 -80.0, %v449_v14  ;;  %1449 = vmatprep.mubr.f32.mxu0 %v38_v54 }
  0xfc   :  { %v544_v20 = vmul.f32 80.0, %v528_v11  ;;  %v622_v21 = vsel %vm1732_vm2, %v494_v13, -1e+30  ;;  %v606_v22 = vsel %vm1732_vm2, %v494_v13, %v590_v17  ;;  %v607_v26 = vsel %vm1701_vm14, %v495_v3, %v591_v18  ;;  %v46_v55 = vld [vmem:[%s1927_s0 + $0x70] sm:$0xff]  ;;  %v39_v56 = vld [vmem:[%s1927_s0 + $0x38] sm:$0xff] }
  0xfd   :  { %638 = vmax.xlane.f32.xlu0 %v622_v21  ;;  %v670_v25 = vsel %vm1693_vm13, %v606_v22, -1e+30  ;;  %v496_v27 = vmul.f32 %v1346_v0, %v464_v16  ;;  %v1363_v32 = vadd.f32 -0.4, %v1445_v45  ;;  %v671_v35 = vsel %vm1707_vm15, %v607_v26, -1e+30 }
  0xfe   :  { %v576_v33 = vmul.f32 %v1362_v7, %v544_v20  ;;  %v497_v37 = vmul.f32 %v1347_v23, %v465_v30  ;;  %v40_v45 = vld [vmem:[%s1927_s0 + $0x40] sm:$0xff]  ;;  %v47_v57 = vld [vmem:[%s1927_s0 + $0x78] sm:$0xff]  ;;  %1450 = vmatmul.mubr.f32.gmra.mxu0 %v39_v56  ;;  %s1595_s0 = smov [#allocation5]  }
  0xff   :  { %686 = vmax.xlane.f32.xlu1 %v670_v25  ;;  %v577_v39 = vmul.f32 %v1363_v32, %v545_v31  ;;  %v624_v43 = vsel %vm1745_vm7, %v496_v27, -1e+30  ;;  %1452 = vmatprep.mubr.f32.mxu1 %v40_v45  ;;  %s1331_s9 = sshll.u32 %s1595_s0, 4  ;;  %s1332_s9 = int_to_ptr.vmem [resolvable:$true] %s1331_s9 }
 0x100   :  { %v592_v36 = vsel %vm1757_vm5, %v576_v33, -1e+30  ;;  %v625_v41 = vsel %vm1779_vm10, %v497_v37, -1e+30  ;;  %1453 = vmatmul.mubr.f32.vlgmr.msra.gmra.mxu1 %v41_v46  ;;  %s1565_s10 = scalar_lea.vmem %s1332_s9, 2048  ;;  %p1570_p6 = scmp.lt.s32.totalorder %s1332_s9, %s1332_s9 }
 0x101   :  { %688 = vmax.xlane.f32.xlu0 %v671_v35  ;;  %v608_v38 = vsel %vm1745_vm7, %v496_v27, %v592_v36  ;;  %v593_v42 = vsel %vm1789_vm6, %v577_v39, -1e+30  ;;  %1455 = vmatprep.mubr.f32.mxu1 %v42_v47  ;;  %p1566_p5 = scmp.ne.s32.totalorder %s1332_s9, %s1565_s10  ;;  %p1571_p7 = scmp.lt.s32.totalorder %s1565_s10, %s1565_s10 }
 0x102   :  { %v672_v29 = vsel %vm1757_vm5, %v608_v38, -1e+30  ;;  %v609_v44 = vsel %vm1779_vm10, %v497_v37, %v593_v42 }
 0x103   :  { %690 = vmax.xlane.f32.xlu1 %v672_v29  ;;  %v673_v28 = vsel %vm1789_vm6, %v609_v44, -1e+30  ;;  %p1572_p8 = por %p1571_p7, %p1570_p6 }
 0x104   :  { %1456 = vmatmul.mubr.f32.gmra.mxu1 %v43_v48 }
 0x105   :  { %644 = vmax.xlane.f32.xlu0 %v625_v41  ;;  %1458 = vmatprep.mubr.f32.mxu1 %v44_v50  ;;  %p1573_p9 = pnand %p1572_p8, %p1566_p5 }
 0x108   :  { %1459 = vmatmul.mubr.f32.gmra.mxu1 %v45_v53 }
 0x109   :  { %642 = vmax.xlane.f32.xlu0 %v624_v43  ;;  %1461 = vmatprep.mubr.f32.mxu1 %v46_v55 }
 0x10c   :  { %1462 = vmatmul.mubr.f32.gmra.mxu1 %v47_v57 }
 0x10d   :  { %692 = vmax.xlane.f32.xlu0 %v673_v28 }
 0x184   :  { %v1839_v58 = vpop.xlane.xlu1 %640 }
 0x185   :  { %vm879_vm0 = vcmp.gt.f32.partialorder %v1839_v58, -1e+29 }
 0x186   :  { %v1841_v59 = vpop.xlane.xlu0 %638 }
 0x187   :  { %vm878_vm4 = vcmp.gt.f32.partialorder %v1841_v59, -1e+29 }
 0x188   :  { %v1843_v61 = vpop.xlane.xlu1 %686 }
 0x189   :  { %v718_v62 = vsel %vm1732_vm2, %v1841_v59, %v1843_v61  ;;  %vm894_vm11 = vcmp.gt.f32.partialorder %v1843_v61, -1e+29 }
 0x18a   :  { %v734_v0 = vsub.f32 %v606_v22, %v718_v62  ;;  %v1849_v1 = vpop.xlane.xlu0 %688 }
 0x18b   :  { %v719_v2 = vsel %vm1701_vm14, %v1839_v58, %v1849_v1 }
 0x18c   :  { %v750_v3 = vmul.f32 1.442695, %v734_v0  ;;  %v735_v4 = vsub.f32 %v607_v26, %v719_v2  ;;  %v1857_v7 = vpop.xlane.xlu1 %690 }
 0x18e   :  { %1505 = vpow2.f32 %v750_v3  ;;  %v752_v5 = vmul.f32 1.442695, %v735_v4  ;;  %v1855_v6 = vpop.xlane.xlu0 %644 }
 0x190   :  { %1507 = vpow2.f32 %v752_v5 }
 0x192   :  { %v1859_v8 = vpop.xlane.xlu0 %642 }
 0x193   :  { %v720_v9 = vsel %vm1745_vm7, %v1859_v8, %v1857_v7 }
 0x194   :  { %v736_v10 = vsub.f32 %v608_v38, %v720_v9 }
 0x196   :  { %v754_v11 = vmul.f32 1.442695, %v736_v10  ;;  %v1865_v12 = vpop.xlane.xlu0 %692 }
 0x197   :  { %v721_v13 = vsel %vm1779_vm10, %v1855_v6, %v1865_v12  ;;  %vm897_vm8 = vcmp.gt.f32.partialorder %v1865_v12, -1e+29 }
 0x198   :  { %1509 = vpow2.f32 %v754_v11  ;;  %v737_v14 = vsub.f32 %v609_v44, %v721_v13 }
 0x19a   :  { %v756_v16 = vmul.f32 1.442695, %v737_v14 }
 0x19b   :  { %v1506_v17 = vpop.eup %1505 }
 0x19c   :  { %1511 = vpow2.f32 %v756_v16  ;;  %v782_v18 = vsel %vm1732_vm2, %v1506_v17, 0.0  ;;  %v830_v22 = vsel %vm1693_vm13, %v1506_v17, 0.0  ;;  %vm895_vm13 = vcmp.gt.f32.partialorder %v1849_v1, -1e+29 }
 0x19d   :  { %v1508_v20 = vpop.eup %1507  ;;  %798 = vadd.xlane.f32.xlu1 %v782_v18  ;;  %vm1263_vm1 = vmand %vm879_vm0, %vm895_vm13  ;;  %vm880_vm2 = vcmp.gt.f32.partialorder %v1859_v8, -1e+29 }
 0x19e   :  { %v783_v21 = vsel %vm1701_vm14, %v1508_v20, 0.0  ;;  %v831_v23 = vsel %vm1707_vm15, %v1508_v20, 0.0  ;;  %vm1262_vm15 = vmand %vm878_vm4, %vm894_vm11 }
 0x19f   :  { %800 = vadd.xlane.f32.xlu0 %v783_v21 }
 0x1a1   :  { %846 = vadd.xlane.f32.xlu1 %v830_v22 }
 0x1a3   :  { %848 = vadd.xlane.f32.xlu0 %v831_v23 }
 0x1a5   :  { %v1510_v25 = vpop.eup %1509 }
 0x1a6   :  { %v784_v26 = vsel %vm1745_vm7, %v1510_v25, 0.0  ;;  %v832_v60 = vsel %vm1757_vm5, %v1510_v25, 0.0  ;;  %vm896_vm7 = vcmp.gt.f32.partialorder %v1857_v7, -1e+29 }
 0x1a7   :  { %802 = vadd.xlane.f32.xlu1 %v784_v26  ;;  %vm1264_vm5 = vmand %vm880_vm2, %vm896_vm7 }
 0x1a9   :  { %v1512_v15 = vpop.eup %1511 }
 0x1aa   :  { %v785_v27 = vsel %vm1779_vm10, %v1512_v15, 0.0  ;;  %v833_v52 = vsel %vm1789_vm6, %v1512_v15, 0.0  ;;  %vm881_vm10 = vcmp.gt.f32.partialorder %v1855_v6, -1e+29 }
 0x1ab   :  { %804 = vadd.xlane.f32.xlu0 %v785_v27  ;;  %850 = vadd.xlane.f32.xlu1 %v832_v60  ;;  %vm1265_vm6 = vmand %vm881_vm10, %vm897_vm8 }
 0x1af   :  { %852 = vadd.xlane.f32.xlu0 %v833_v52 }
 0x1ba   :  { %v1448_v19 = vpop.f32.mrf.mxu0 }
 0x1bc   :  { %v150_v35 = vpop.f32.mrf.mxu0 }
 0x1be   :  { %v1451_v37 = vpop.f32.mrf.mxu0 }
 0x1c0   :  { %v1454_v63 = vpop.f32.mrf.mxu1  ;;  %v160_v38 = vpop.f32.mrf.mxu0 }
 0x1c2   :  { %v170_v30 = vpop.f32.mrf.mxu1 }
 0x1c4   :  { %v1457_v31 = vpop.f32.mrf.mxu1 }
 0x1c6   :  { %v180_v32 = vpop.f32.mrf.mxu1 }
 0x1c8   :  { %v1460_v33 = vpop.f32.mrf.mxu1 }
 0x1ca   :  { %v190_v36 = vpop.f32.mrf.mxu1 }
 0x1cc   :  { %v1463_v34 = vpop.f32.mrf.mxu1 }
 0x1ce   :  { %v200_v29 = vpop.f32.mrf.mxu1 }
 0x226   :  { %v799_v39 = vpop.xlane.xlu1 %798 }
 0x227   :  { %1513 = vlog2.f32 %v799_v39 }
 0x228   :  { %v801_v40 = vpop.xlane.xlu0 %800 }
 0x229   :  { %1515 = vlog2.f32 %v801_v40 }
 0x22a   :  { %v847_v41 = vpop.xlane.xlu1 %846 }
 0x22b   :  { %1517 = vlog2.f32 %v847_v41 }
 0x22c   :  { %v849_v42 = vpop.xlane.xlu0 %848 }
 0x22d   :  { %1519 = vlog2.f32 %v849_v42 }
 0x230   :  { %v803_v43 = vpop.xlane.xlu1 %802 }
 0x231   :  { %1521 = vlog2.f32 %v803_v43 }
 0x234   :  { %v1514_v44 = vpop.eup %1513  ;;  %v805_v28 = vpop.xlane.xlu0 %804 }
 0x235   :  { %v851_v45 = vpop.xlane.xlu1 %850  ;;  %1523 = vlog2.f32 %v805_v28  ;;  %v911_v47 = vmul.f32 0.6931472, %v1514_v44 }
 0x236   :  { %v1516_v46 = vpop.eup %1515  ;;  %1525 = vlog2.f32 %v851_v45 }
 0x237   :  { %v913_v50 = vmul.f32 0.6931472, %v1516_v46  ;;  %v942_v54 = vadd.f32 %v911_v47, %v1841_v59 }
 0x238   :  { %v1518_v48 = vpop.eup %1517  ;;  %v853_v49 = vpop.xlane.xlu0 %852 }
 0x239   :  { %v959_v51 = vmul.f32 0.6931472, %v1518_v48  ;;  %1527 = vlog2.f32 %v853_v49  ;;  %v943_v57 = vadd.f32 %v913_v50, %v1839_v58 }
 0x23a   :  { %v1520_v53 = vpop.eup %1519 }
 0x23b   :  { %v990_v55 = vadd.f32 %v959_v51, %v1843_v61  ;;  %v961_v56 = vmul.f32 0.6931472, %v1520_v53 }
 0x23d   :  { %v1890_v62 = vadd.f32 %v990_v55, %v942_v54  ;;  %v991_v0 = vadd.f32 %v961_v56, %v1849_v1 }
 0x23e   :  { %v1522_v2 = vpop.eup %1521 }
 0x23f   :  { %v1038_v3 = vand.u32 2147483647, %v1890_v62  ;;  %v1894_v4 = vadd.f32 %v991_v0, %v943_v57  ;;  %v915_v11 = vmul.f32 0.6931472, %v1522_v2  ;;  %v1022_v48 = vmax.f32 %v1890_v62, 0.0 }
 0x241   :  { %v1054_v5 = vsub.f32 0.0, %v1038_v3  ;;  %v1039_v9 = vand.u32 2147483647, %v1894_v4  ;;  %v944_v22 = vadd.f32 %v915_v11, %v1859_v8  ;;  %v1023_v54 = vmax.f32 %v1894_v4, 0.0 }
 0x242   :  { %v1524_v10 = vpop.eup %1523 }
 0x243   :  { %v1526_v13 = vpop.eup %1525  ;;  %v1070_v14 = vmul.f32 1.442695, %v1054_v5  ;;  %v1055_v16 = vsub.f32 0.0, %v1039_v9  ;;  %v917_v20 = vmul.f32 0.6931472, %v1524_v10 }
 0x244   :  { %v963_v17 = vmul.f32 0.6931472, %v1526_v13 }
 0x245   :  { %1529 = vpow2.f32 %v1070_v14  ;;  %v1072_v18 = vmul.f32 1.442695, %v1055_v16  ;;  %v945_v15 = vadd.f32 %v917_v20, %v1855_v6 }
 0x246   :  { %v1528_v21 = vpop.eup %1527  ;;  %v992_v23 = vadd.f32 %v963_v17, %v1857_v7 }
 0x247   :  { %1531 = vpow2.f32 %v1072_v18  ;;  %v965_v25 = vmul.f32 0.6931472, %v1528_v21 }
 0x248   :  { %v1899_v26 = vadd.f32 %v992_v23, %v944_v22 }
 0x249   :  { %v993_v27 = vadd.f32 %v965_v25, %v1865_v12 }
 0x24a   :  { %v1040_v60 = vand.u32 2147483647, %v1899_v26  ;;  %v1024_v59 = vmax.f32 %v1899_v26, 0.0 }
 0x24b   :  { %v1904_v52 = vadd.f32 %v993_v27, %v945_v15 }
 0x24c   :  { %v1056_v63 = vsub.f32 0.0, %v1040_v60 }
 0x24d   :  { %v1041_v30 = vand.u32 2147483647, %v1904_v52  ;;  %v1025_v17 = vmax.f32 %v1904_v52, 0.0 }
 0x24e   :  { %v1074_v31 = vmul.f32 1.442695, %v1056_v63 }
 0x24f   :  { %v1057_v32 = vsub.f32 0.0, %v1041_v30 }
 0x250   :  { %1533 = vpow2.f32 %v1074_v31 }
 0x251   :  { %v1076_v19 = vmul.f32 1.442695, %v1057_v32 }
 0x252   :  { %v1530_v33 = vpop.eup %1529 }
 0x253   :  { %v1102_v35 = vadd.f32 1.0, %v1530_v33  ;;  %1535 = vpow2.f32 %v1076_v19  ;;  %v1105_v34 = vmul.f32 -0.5, %v1530_v33  ;;  %v1108_v41 = vand.u32 2147483647, %v1530_v33 }
 0x254   :  { %v1532_v36 = vpop.eup %1531 }
 0x255   :  { %1537 = vlog2.f32 %v1102_v35  ;;  %v1111_v37 = vadd.f32 1.0, %v1532_v36  ;;  %v1114_v29 = vmul.f32 -0.5, %v1532_v36  ;;  %v1106_v39 = vadd.f32 1.0, %v1105_v34 }
 0x256   :  { %v1117_v28 = vand.u32 2147483647, %v1532_v36  ;;  %vm1109_vm12 = vcmp.lt.f32.partialorder %v1108_v41, 0.0004427343 }
 0x257   :  { %1539 = vlog2.f32 %v1111_v37  ;;  %v1115_v42 = vadd.f32 1.0, %v1114_v29  ;;  %v1107_v46 = vmul.f32 %v1530_v33, %v1106_v39 }
 0x258   :  { %vm1118_vm14 = vcmp.lt.f32.partialorder %v1117_v28, 0.0004427343 }
 0x259   :  { %v1116_v51 = vmul.f32 %v1532_v36, %v1115_v42 }
 0x25d   :  { %v1534_v38 = vpop.eup %1533 }
 0x25e   :  { %v1120_v24 = vadd.f32 1.0, %v1534_v38  ;;  %v1123_v55 = vmul.f32 -0.5, %v1534_v38  ;;  %v1126_v2 = vand.u32 2147483647, %v1534_v38 }
 0x260   :  { %v1536_v40 = vpop.eup %1535  ;;  %1541 = vlog2.f32 %v1120_v24  ;;  %v1124_v0 = vadd.f32 1.0, %v1123_v55  ;;  %vm1127_vm3 = vcmp.lt.f32.partialorder %v1126_v2, 0.0004427343 }
 0x261   :  { %v1129_v43 = vadd.f32 1.0, %v1536_v40  ;;  %v1132_v62 = vmul.f32 -0.5, %v1536_v40  ;;  %v1135_v10 = vand.u32 2147483647, %v1536_v40 }
 0x262   :  { %v1538_v44 = vpop.eup %1537  ;;  %v1125_v9 = vmul.f32 %v1534_v38, %v1124_v0 }
 0x263   :  { %v1104_v45 = vmul.f32 0.6931472, %v1538_v44  ;;  %1543 = vlog2.f32 %v1129_v43  ;;  %v1133_v5 = vadd.f32 1.0, %v1132_v62  ;;  %vm1136_vm9 = vcmp.lt.f32.partialorder %v1135_v10, 0.0004427343 }
 0x264   :  { %v1540_v47 = vpop.eup %1539 }
 0x265   :  { %v1110_v49 = vsel %vm1109_vm12, %v1107_v46, %v1104_v45  ;;  %v1113_v50 = vmul.f32 0.6931472, %v1540_v47  ;;  %v1134_v16 = vmul.f32 %v1536_v40, %v1133_v5 }
 0x266   :  { %v1246_v53 = vadd.f32 %v1110_v49, %v1022_v48 }
 0x267   :  { %v1119_v56 = vsel %vm1118_vm14, %v1116_v51, %v1113_v50 }
 0x268   :  { %v1294_v61 = vsel %vm1262_vm15, %v1246_v53, 0.0  ;;  %v1247_v57 = vadd.f32 %v1119_v56, %v1023_v54 }
 0x269   :  { %1310 = vst [vmem:[#allocation5] sm:$0xff] %v1294_v61 }
 0x26a   :  { %v1295_v1 = vsel %vm1263_vm1, %v1247_v57, 0.0 }
 0x26b   :  { %1311 = vst [vmem:[#allocation5 + $0x8] sm:$0xff] %v1295_v1 }
 0x26d   :  { %v1542_v3 = vpop.eup %1541 }
 0x26e   :  { %v1122_v4 = vmul.f32 0.6931472, %v1542_v3 }
 0x270   :  { %v1544_v58 = vpop.eup %1543  ;;  %v1128_v11 = vsel %vm1127_vm3, %v1125_v9, %v1122_v4 }
 0x271   :  { %v1248_v13 = vadd.f32 %v1128_v11, %v1024_v59  ;;  %v1131_v14 = vmul.f32 0.6931472, %v1544_v58 }
 0x273   :  { %v1296_v18 = vsel %vm1264_vm5, %v1248_v13, 0.0  ;;  %v1137_v8 = vsel %vm1136_vm9, %v1134_v16, %v1131_v14 }
 0x274   :  { %1312 = vst [vmem:[#allocation5 + $0x10] sm:$0xff] %v1296_v18  ;;  %v1249_v20 = vadd.f32 %v1137_v8, %v1025_v17 }
 0x276   :  { %v1297_v7 = vsel %vm1265_vm6, %v1249_v20, 0.0 }
 0x277   :  { %1313 = vst [vmem:[#allocation5 + $0x18] sm:$0xff] %v1297_v7 }
 0x278   :  { %1576 = shalt.err (!%p1573_p9)
}
 0x279   :  { %1337 = dma.vmem_to_hbm [thread:$0]  %s1332_s9, 2048, %s1931_s4, [#allocation4], %s1590_s18, %s1590_s18, %s1591_s19  }
 0x27a   :  { %1587 = dma.done.wait [#allocation4], 2048  }
 0x27b   :  { %1588 = vsyncadd [#allocation4], 4294965248 }
 0x27c   :  { %1341 = vsyncpa [#allocation3], 1 }
 0x27d   :  { %1342 = vsyncpa [#allocation4], 1 }

// kernel: tpu_custom_call.1
= control target key start
LH: loop header
LB: loop body
LE: loop exit
PB: predicated region body
PF: predicated region fallthrough
CT: control target
= control target key end

     0   :  { %9 = vsyncpa [#allocation3], 0  ;;  %s1927_s0 = inlined_call_operand.vmem [shape: f32[128,128], index: 0, kind: input, shape index: {}]   ;;  %s1928_s1 = inlined_call_operand.hbm [shape: f32[128,128], index: 1, kind: input, shape index: {}]   ;;  %s1929_s2 = inlined_call_operand.vmem [shape: s32[128,1], index: 2, kind: input, shape index: {}]   ;;  %s1930_s3 = inlined_call_operand.vmem [shape: s32[1,128], index: 3, kind: input, shape index: {}]   ;;  %s1931_s4 = inlined_call_operand.hbm [shape: f32[128,128], index: 4, kind: output, shape index: {}]  }
   0x1   :  { %10 = vsyncpa [#allocation4], 0  ;;  %s1589_s15 = smov [#allocation2]  }
   0x2   :  { %s18_s16 = sshll.u32 %s1589_s15, 4  ;;  %s19_s16 = int_to_ptr.vmem [resolvable:$true] %s18_s16 }
   0x3   :  { %s1553_s17 = scalar_lea.vmem %s19_s16, 2048  ;;  %p1558_p1 = scmp.lt.s32.totalorder %s19_s16, %s19_s16 }
   0x4   :  { %p1554_p0 = scmp.ne.s32.totalorder %s19_s16, %s1553_s17  ;;  %p1559_p2 = scmp.lt.s32.totalorder %s1553_s17, %s1553_s17 }
   0x6   :  { %p1560_p3 = por %p1559_p2, %p1558_p1 }
   0x8   :  { %p1561_p4 = pnand %p1560_p3, %p1554_p0 }
   0xa   :  { %1564 = shalt.err (!%p1561_p4)
}
   0xb   :  { %s1590_s18 = smov 128   ;;  %s1591_s19 = smov 8  }
   0xc   :  { %24 = dma.hbm_to_vmem [thread:$0]  %s1928_s1, 2048, %s19_s16, [#allocation3], %s1590_s18, %s1590_s18, %s1591_s19  }
   0xd   :  { %1585 = dma.done.wait [#allocation3], 2048  }
   0xe   :  { %1586 = vsyncadd [#allocation3], 4294965248  ;;  %v1592_v0 = vmov 0   ;;  %v63_v1 = vld [vmem:[#allocation2 + $0x78] sm:$0xff]  ;;  %v62_v2 = vld [vmem:[#allocation2 + $0x70] sm:$0xff]  ;;  %v294_v25 = vlaneseq  ;;  %vm1593_vm6 = vmmov 1  }
   0xf   :  { %1503 = vset.pattern.permute.xlu0 %v1592_v0  ;;  %1504 = vset.pattern.permute.xlu1 %v1592_v0  ;;  %v61_v3 = vld [vmem:[#allocation2 + $0x68] sm:$0xff]  ;;  %v60_v4 = vld [vmem:[#allocation2 + $0x60] sm:$0xff]  ;;  %v59_v6 = vld [vmem:[#allocation2 + $0x58] sm:$0xff] }
  0x10   :  { %1408 = vmatprep.subr.mxu0 %v63_v1  ;;  %1464 = vmatprep.subr.mxu1 %v63_v1  ;;  %v32_v5 = vld [vmem:[%s1927_s0] sm:$0xff]  ;;  %v211_v8 = vld [vmem:[%s1929_s2 + $0x10] sm:$0xff]  ;;  %v210_v10 = vld [vmem:[%s1929_s2 + $0x8] sm:$0xff]  ;;  %v295_v27 = vshrl.u32 %v294_v25, 7  ;;  %v1651_v28 = vand.u32 127, %v294_v25 }
  0x11   :  { %1409 = vmatpush3.msra.mxu0 %v63_v1  ;;  %1480 = vmatpush3.msra.mxu1 %v63_v1  ;;  %v209_v7 = vld [vmem:[%s1929_s2] sm:$0xff]  ;;  %v58_v9 = vld [vmem:[#allocation2 + $0x50] sm:$0xff]  ;;  %v212_v11 = vld [vmem:[%s1929_s2 + $0x18] sm:$0xff] }
  0x12   :  { %1410 = vmatprep.subr.mxu0 %v62_v2  ;;  %1465 = vmatprep.subr.mxu1 %v62_v2  ;;  %v57_v12 = vld [vmem:[#allocation2 + $0x48] sm:$0xff]  ;;  %v56_v13 = vld [vmem:[#allocation2 + $0x40] sm:$0xff]  ;;  %v55_v14 = vld [vmem:[#allocation2 + $0x38] sm:$0xff]  ;;  %v296_v30 = vadd.s32 8, %v295_v27  ;;  %vm331_vm0 = vcmp.ne.s32.totalorder %v295_v27, %v1651_v28  ;;  %v297_v32 = vadd.s32 16, %v295_v27  ;;  %v1660_v34 = vadd.s32 24, %v295_v27 }
  0x13   :  { %1411 = vmatpush3.msra.mxu0 %v62_v2  ;;  %1481 = vmatpush3.msra.mxu1 %v62_v2  ;;  %v54_v15 = vld [vmem:[#allocation2 + $0x30] sm:$0xff]  ;;  %v53_v16 = vld [vmem:[#allocation2 + $0x28] sm:$0xff]  ;;  %v52_v17 = vld [vmem:[#allocation2 + $0x20] sm:$0xff]  ;;  %vm347_vm4 = vcmp.lt.s32.totalorder %v1651_v28, 32 }
  0x14   :  { %1412 = vmatprep.subr.mxu0 %v61_v3  ;;  %1466 = vmatprep.subr.mxu1 %v61_v3  ;;  %v51_v18 = vld [vmem:[#allocation2 + $0x18] sm:$0xff]  ;;  %v50_v19 = vld [vmem:[#allocation2 + $0x10] sm:$0xff]  ;;  %v49_v20 = vld [vmem:[#allocation2 + $0x8] sm:$0xff]  ;;  %vm332_vm2 = vcmp.ne.s32.totalorder %v296_v30, %v1651_v28  ;;  %vm333_vm8 = vcmp.ne.s32.totalorder %v297_v32, %v1651_v28  ;;  %vm334_vm11 = vcmp.ne.s32.totalorder %v1660_v34, %v1651_v28 }
  0x15   :  { %1413 = vmatpush3.msra.mxu0 %v61_v3  ;;  %1440 = vmatprep.mubr.f32.mxu0 %v32_v5  ;;  %v48_v21 = vld [vmem:[#allocation2] sm:$0xff]  ;;  %v33_v22 = vld [vmem:[%s1927_s0 + $0x8] sm:$0xff]  ;;  %v34_v23 = vld [vmem:[%s1927_s0 + $0x10] sm:$0xff] }
  0x16   :  { %1414 = vmatprep.subr.mxu0 %v60_v4  ;;  %227 = vperm.xlu0 %1503, %v209_v7   ;;  %v35_v24 = vld [vmem:[%s1927_s0 + $0x18] sm:$0xff]  ;;  %v1656_v29 = vld [vmem:[%s1930_s3] ss:$0 sm:$0xff]  ;;  %v41_v46 = vld [vmem:[%s1927_s0 + $0x48] sm:$0xff] }
  0x17   :  { %1415 = vmatpush3.msra.mxu0 %v60_v4  ;;  %233 = vperm.xlu1 %1504, %v211_v8  }
  0x18   :  { %1416 = vmatprep.subr.mxu0 %v59_v6  ;;  %1482 = vmatpush3.msra.mxu1 %v61_v3 }
  0x19   :  { %1417 = vmatpush3.msra.mxu0 %v59_v6  ;;  %1467 = vmatprep.subr.mxu1 %v60_v4 }
  0x1a   :  { %1418 = vmatprep.subr.mxu0 %v58_v9  ;;  %230 = vperm.xlu0 %1503, %v210_v10  }
  0x1b   :  { %1419 = vmatpush3.msra.mxu0 %v58_v9  ;;  %236 = vperm.xlu1 %1504, %v212_v11  }
  0x1c   :  { %1420 = vmatprep.subr.mxu0 %v57_v12  ;;  %1483 = vmatpush3.msra.mxu1 %v60_v4 }
  0x1d   :  { %1421 = vmatpush3.msra.mxu0 %v57_v12  ;;  %1468 = vmatprep.subr.mxu1 %v59_v6 }
  0x1e   :  { %1422 = vmatprep.subr.mxu0 %v56_v13  ;;  %1484 = vmatpush3.msra.mxu1 %v59_v6 }
  0x1f   :  { %1423 = vmatpush3.msra.mxu0 %v56_v13  ;;  %1469 = vmatprep.subr.mxu1 %v58_v9 }
  0x20   :  { %1424 = vmatprep.subr.mxu0 %v55_v14  ;;  %1485 = vmatpush3.msra.mxu1 %v58_v9 }
  0x21   :  { %1425 = vmatpush3.msra.mxu0 %v55_v14  ;;  %1470 = vmatprep.subr.mxu1 %v57_v12 }
  0x22   :  { %1426 = vmatprep.subr.mxu0 %v54_v15  ;;  %1486 = vmatpush3.msra.mxu1 %v57_v12 }
  0x23   :  { %1427 = vmatpush3.msra.mxu0 %v54_v15  ;;  %1471 = vmatprep.subr.mxu1 %v56_v13 }
  0x24   :  { %1428 = vmatprep.subr.mxu0 %v53_v16  ;;  %1487 = vmatpush3.msra.mxu1 %v56_v13 }
  0x25   :  { %1429 = vmatpush3.msra.mxu0 %v53_v16  ;;  %1472 = vmatprep.subr.mxu1 %v55_v14 }
  0x26   :  { %1430 = vmatprep.subr.mxu0 %v52_v17  ;;  %1488 = vmatpush3.msra.mxu1 %v55_v14 }
  0x27   :  { %1431 = vmatpush3.msra.mxu0 %v52_v17  ;;  %1473 = vmatprep.subr.mxu1 %v54_v15 }
  0x28   :  { %1432 = vmatprep.subr.mxu0 %v51_v18  ;;  %1489 = vmatpush3.msra.mxu1 %v54_v15 }
  0x29   :  { %1433 = vmatpush3.msra.mxu0 %v51_v18  ;;  %1474 = vmatprep.subr.mxu1 %v53_v16 }
  0x2a   :  { %1434 = vmatprep.subr.mxu0 %v50_v19  ;;  %1490 = vmatpush3.msra.mxu1 %v53_v16 }
  0x2b   :  { %1435 = vmatpush3.msra.mxu0 %v50_v19  ;;  %1475 = vmatprep.subr.mxu1 %v52_v17 }
  0x2c   :  { %1436 = vmatprep.subr.mxu0 %v49_v20  ;;  %1491 = vmatpush3.msra.mxu1 %v52_v17 }
  0x2d   :  { %1437 = vmatpush3.msra.mxu0 %v49_v20  ;;  %1476 = vmatprep.subr.mxu1 %v51_v18 }
  0x2e   :  { %1438 = vmatprep.subr.mxu0 %v48_v21  ;;  %1492 = vmatpush3.msra.mxu1 %v51_v18 }
  0x2f   :  { %1439 = vmatpush3.msra.mxu0 %v48_v21  ;;  %1477 = vmatprep.subr.mxu1 %v50_v19 }
  0x30   :  { %1441 = vmatmul.mubr.f32.vlgmr.msra.gmra.mxu0 %v33_v22  ;;  %1493 = vmatpush3.msra.mxu1 %v50_v19 }
  0x31   :  { %1443 = vmatprep.mubr.f32.mxu0 %v34_v23  ;;  %1478 = vmatprep.subr.mxu1 %v49_v20 }
  0x32   :  { %1494 = vmatpush3.msra.mxu1 %v49_v20 }
  0x33   :  { %1479 = vmatprep.subr.mxu1 %v48_v21 }
  0x34   :  { %1444 = vmatmul.mubr.f32.gmra.mxu0 %v35_v24  ;;  %1495 = vmatpush3.msra.mxu1 %v48_v21  ;;  %v1594_v24 = vmov 0.0  }
  0x35   :  { %1314 = vst [vmem:[#allocation5 + $0x20] sm:$0xff] %v1594_v24  ;;  %1315 = vst [vmem:[#allocation5 + $0x28] sm:$0xff] %v1594_v24 }
  0x36   :  { %1316 = vst [vmem:[#allocation5 + $0x30] sm:$0xff] %v1594_v24  ;;  %1317 = vst [vmem:[#allocation5 + $0x38] sm:$0xff] %v1594_v24 }
  0x37   :  { %1318 = vst [vmem:[#allocation5 + $0x40] sm:$0xff] %v1594_v24  ;;  %1319 = vst [vmem:[#allocation5 + $0x48] sm:$0xff] %v1594_v24 }
  0x38   :  { %1320 = vst [vmem:[#allocation5 + $0x50] sm:$0xff] %v1594_v24  ;;  %1321 = vst [vmem:[#allocation5 + $0x58] sm:$0xff] %v1594_v24 }
  0x39   :  { %1322 = vst [vmem:[#allocation5 + $0x60] sm:$0xff] %v1594_v24  ;;  %1323 = vst [vmem:[#allocation5 + $0x68] sm:$0xff] %v1594_v24 }
  0x3a   :  { %1324 = vst [vmem:[#allocation5 + $0x70] sm:$0xff] %v1594_v24  ;;  %1325 = vst [vmem:[#allocation5 + $0x78] sm:$0xff] %v1594_v24 }
  0x91   :  { %v228_v26 = vpop.permute.xlu0 %227 }
  0x92   :  { %vm278_vm1 = vcmp.eq.s32.totalorder %v228_v26, %v1656_v29  ;;  %v234_v39 = vpop.permute.xlu1 %233 }
  0x93   :  { %vm1665_vm5 = vmand %vm278_vm1, %vm331_vm0  ;;  %vm280_vm9 = vcmp.eq.s32.totalorder %v234_v39, %v1656_v29 }
  0x94   :  { %vm1670_vm7 = vmxor %vm278_vm1, %vm1593_vm6 }
  0x95   :  { %v231_v31 = vpop.permute.xlu0 %230  ;;  %vm1693_vm13 = vmand %vm1670_vm7, %vm347_vm4 }
  0x96   :  { %vm279_vm3 = vcmp.eq.s32.totalorder %v231_v31, %v1656_v29  ;;  %v237_v2 = vpop.permute.xlu1 %236  ;;  %vm1715_vm0 = vmand %vm280_vm9, %vm333_vm8 }
  0x97   :  { %vm1680_vm10 = vmand %vm279_vm3, %vm332_vm2 }
  0x98   :  { %vm399_vm12 = vmxor %vm279_vm3, %vm1593_vm6  ;;  %vm281_vm3 = vcmp.eq.s32.totalorder %v237_v2, %v1656_v29 }
  0x99   :  { %vm1701_vm14 = vmand %vm1680_vm10, %vm347_vm4 }
  0x9a   :  { %vm1707_vm15 = vmand %vm399_vm12, %vm347_vm4 }
  0x9b   :  { %vm1722_vm1 = vmxor %vm280_vm9, %vm1593_vm6 }
  0x9c   :  { %vm1732_vm2 = vmand %vm1665_vm5, %vm347_vm4 }
  0x9d   :  { %vm1745_vm7 = vmand %vm1715_vm0, %vm347_vm4 }
  0x9e   :  { %vm1757_vm5 = vmand %vm1722_vm1, %vm347_vm4 }
  0x9f   :  { %vm367_vm8 = vmand %vm281_vm3, %vm334_vm11 }
  0xa0   :  { %vm401_vm9 = vmxor %vm281_vm3, %vm1593_vm6 }
  0xa1   :  { %vm1779_vm10 = vmand %vm367_vm8, %vm347_vm4 }
  0xa2   :  { %vm1789_vm6 = vmand %vm401_vm9, %vm347_vm4 }
  0xf0   :  { %v1442_v33 = vpop.f32.mrf.mxu0 }
  0xf1   :  { %v511_v35 = vadd.f32 0.4, %v1442_v33  ;;  %v431_v36 = vsub.f32 1.4, %v1442_v33  ;;  %v1361_v44 = vadd.f32 -0.4, %v1442_v33 }
  0xf2   :  { %v130_v38 = vpop.f32.mrf.mxu0  ;;  %v1345_v51 = vadd.f32 -0.6, %v1442_v33 }
  0xf3   :  { %v527_v40 = vmax.f32 %v511_v35, 0.0  ;;  %v510_v42 = vadd.f32 0.4, %v130_v38  ;;  %v447_v43 = vmax.f32 %v431_v36, 0.0  ;;  %v430_v47 = vsub.f32 1.4, %v130_v38 }
  0xf4   :  { %v1445_v45 = vpop.f32.mrf.mxu0  ;;  %v1360_v53 = vadd.f32 -0.4, %v130_v38  ;;  %v1344_v62 = vadd.f32 -0.6, %v130_v38 }
  0xf5   :  { %v543_v48 = vmul.f32 80.0, %v527_v40  ;;  %v526_v49 = vmax.f32 %v510_v42, 0.0  ;;  %v513_v50 = vadd.f32 0.4, %v1445_v45  ;;  %v463_v55 = vmul.f32 -80.0, %v447_v43 }
  0xf6   :  { %v140_v54 = vpop.f32.mrf.mxu0  ;;  %v446_v56 = vmax.f32 %v430_v47, 0.0  ;;  %v433_v57 = vsub.f32 1.4, %v1445_v45  ;;  %v1347_v23 = vadd.f32 -0.6, %v1445_v45  ;;  %v42_v47 = vld [vmem:[%s1927_s0 + $0x50] sm:$0xff] }
  0xf7   :  { %v542_v58 = vmul.f32 80.0, %v526_v49  ;;  %v529_v59 = vmax.f32 %v513_v50, 0.0  ;;  %v432_v61 = vsub.f32 1.4, %v140_v54  ;;  %v1346_v0 = vadd.f32 -0.6, %v140_v54 }
  0xf8   :  { %v512_v1 = vadd.f32 0.4, %v140_v54  ;;  %v495_v3 = vmul.f32 %v1345_v51, %v463_v55  ;;  %v462_v4 = vmul.f32 -80.0, %v446_v56  ;;  %v1362_v7 = vadd.f32 -0.4, %v140_v54  ;;  %v36_v49 = vld [vmem:[%s1927_s0 + $0x20] sm:$0xff] }
  0xf9   :  { %v448_v6 = vmax.f32 %v432_v61, 0.0  ;;  %v574_v8 = vmul.f32 %v1360_v53, %v542_v58  ;;  %v575_v9 = vmul.f32 %v1361_v44, %v543_v48  ;;  %v449_v14 = vmax.f32 %v433_v57, 0.0  ;;  %v43_v48 = vld [vmem:[%s1927_s0 + $0x58] sm:$0xff]  ;;  %v44_v50 = vld [vmem:[%s1927_s0 + $0x60] sm:$0xff]  ;;  %1446 = vmatprep.mubr.f32.mxu0 %v36_v49  ;;  %v37_v51 = vld [vmem:[%s1927_s0 + $0x28] sm:$0xff] }
  0xfa   :  { %v528_v11 = vmax.f32 %v512_v1, 0.0  ;;  %v623_v12 = vsel %vm1701_vm14, %v495_v3, -1e+30  ;;  %v494_v13 = vmul.f32 %v1344_v62, %v462_v4  ;;  %v545_v31 = vmul.f32 80.0, %v529_v59  ;;  %v45_v53 = vld [vmem:[%s1927_s0 + $0x68] sm:$0xff]  ;;  %v38_v54 = vld [vmem:[%s1927_s0 + $0x30] sm:$0xff]  ;;  %1447 = vmatmul.mubr.f32.gmra.mxu0 %v37_v51 }
  0xfb   :  { %v464_v16 = vmul.f32 -80.0, %v448_v6  ;;  %640 = vmax.xlane.f32.xlu1 %v623_v12  ;;  %v590_v17 = vsel %vm1693_vm13, %v574_v8, -1e+30  ;;  %v591_v18 = vsel %vm1707_vm15, %v575_v9, -1e+30  ;;  %v465_v30 = vmul.f32 -80.0, %v449_v14  ;;  %1449 = vmatprep.mubr.f32.mxu0 %v38_v54 }
  0xfc   :  { %v544_v20 = vmul.f32 80.0, %v528_v11  ;;  %v622_v21 = vsel %vm1732_vm2, %v494_v13, -1e+30  ;;  %v606_v22 = vsel %vm1732_vm2, %v494_v13, %v590_v17  ;;  %v607_v26 = vsel %vm1701_vm14, %v495_v3, %v591_v18  ;;  %v46_v55 = vld [vmem:[%s1927_s0 + $0x70] sm:$0xff]  ;;  %v39_v56 = vld [vmem:[%s1927_s0 + $0x38] sm:$0xff] }
  0xfd   :  { %638 = vmax.xlane.f32.xlu0 %v622_v21  ;;  %v670_v25 = vsel %vm1693_vm13, %v606_v22, -1e+30  ;;  %v496_v27 = vmul.f32 %v1346_v0, %v464_v16  ;;  %v1363_v32 = vadd.f32 -0.4, %v1445_v45  ;;  %v671_v35 = vsel %vm1707_vm15, %v607_v26, -1e+30 }
  0xfe   :  { %v576_v33 = vmul.f32 %v1362_v7, %v544_v20  ;;  %v497_v37 = vmul.f32 %v1347_v23, %v465_v30  ;;  %v40_v45 = vld [vmem:[%s1927_s0 + $0x40] sm:$0xff]  ;;  %v47_v57 = vld [vmem:[%s1927_s0 + $0x78] sm:$0xff]  ;;  %1450 = vmatmul.mubr.f32.gmra.mxu0 %v39_v56  ;;  %s1595_s0 = smov [#allocation5]  }
  0xff   :  { %686 = vmax.xlane.f32.xlu1 %v670_v25  ;;  %v577_v39 = vmul.f32 %v1363_v32, %v545_v31  ;;  %v624_v43 = vsel %vm1745_vm7, %v496_v27, -1e+30  ;;  %1452 = vmatprep.mubr.f32.mxu1 %v40_v45  ;;  %s1331_s9 = sshll.u32 %s1595_s0, 4  ;;  %s1332_s9 = int_to_ptr.vmem [resolvable:$true] %s1331_s9 }
 0x100   :  { %v592_v36 = vsel %vm1757_vm5, %v576_v33, -1e+30  ;;  %v625_v41 = vsel %vm1779_vm10, %v497_v37, -1e+30  ;;  %1453 = vmatmul.mubr.f32.vlgmr.msra.gmra.mxu1 %v41_v46  ;;  %s1565_s10 = scalar_lea.vmem %s1332_s9, 2048  ;;  %p1570_p6 = scmp.lt.s32.totalorder %s1332_s9, %s1332_s9 }
 0x101   :  { %688 = vmax.xlane.f32.xlu0 %v671_v35  ;;  %v608_v38 = vsel %vm1745_vm7, %v496_v27, %v592_v36  ;;  %v593_v42 = vsel %vm1789_vm6, %v577_v39, -1e+30  ;;  %1455 = vmatprep.mubr.f32.mxu1 %v42_v47  ;;  %p1566_p5 = scmp.ne.s32.totalorder %s1332_s9, %s1565_s10  ;;  %p1571_p7 = scmp.lt.s32.totalorder %s1565_s10, %s1565_s10 }
 0x102   :  { %v672_v29 = vsel %vm1757_vm5, %v608_v38, -1e+30  ;;  %v609_v44 = vsel %vm1779_vm10, %v497_v37, %v593_v42 }
 0x103   :  { %690 = vmax.xlane.f32.xlu1 %v672_v29  ;;  %v673_v28 = vsel %vm1789_vm6, %v609_v44, -1e+30  ;;  %p1572_p8 = por %p1571_p7, %p1570_p6 }
 0x104   :  { %1456 = vmatmul.mubr.f32.gmra.mxu1 %v43_v48 }
 0x105   :  { %644 = vmax.xlane.f32.xlu0 %v625_v41  ;;  %1458 = vmatprep.mubr.f32.mxu1 %v44_v50  ;;  %p1573_p9 = pnand %p1572_p8, %p1566_p5 }
 0x108   :  { %1459 = vmatmul.mubr.f32.gmra.mxu1 %v45_v53 }
 0x109   :  { %642 = vmax.xlane.f32.xlu0 %v624_v43  ;;  %1461 = vmatprep.mubr.f32.mxu1 %v46_v55 }
 0x10c   :  { %1462 = vmatmul.mubr.f32.gmra.mxu1 %v47_v57 }
 0x10d   :  { %692 = vmax.xlane.f32.xlu0 %v673_v28 }
 0x184   :  { %v1839_v58 = vpop.xlane.xlu1 %640 }
 0x185   :  { %vm879_vm0 = vcmp.gt.f32.partialorder %v1839_v58, -1e+29 }
 0x186   :  { %v1841_v59 = vpop.xlane.xlu0 %638 }
 0x187   :  { %vm878_vm4 = vcmp.gt.f32.partialorder %v1841_v59, -1e+29 }
 0x188   :  { %v1843_v61 = vpop.xlane.xlu1 %686 }
 0x189   :  { %v718_v62 = vsel %vm1732_vm2, %v1841_v59, %v1843_v61  ;;  %vm894_vm11 = vcmp.gt.f32.partialorder %v1843_v61, -1e+29 }
 0x18a   :  { %v734_v0 = vsub.f32 %v606_v22, %v718_v62  ;;  %v1849_v1 = vpop.xlane.xlu0 %688 }
 0x18b   :  { %v719_v2 = vsel %vm1701_vm14, %v1839_v58, %v1849_v1 }
 0x18c   :  { %v750_v3 = vmul.f32 1.442695, %v734_v0  ;;  %v735_v4 = vsub.f32 %v607_v26, %v719_v2  ;;  %v1857_v7 = vpop.xlane.xlu1 %690 }
 0x18e   :  { %1505 = vpow2.f32 %v750_v3  ;;  %v752_v5 = vmul.f32 1.442695, %v735_v4  ;;  %v1855_v6 = vpop.xlane.xlu0 %644 }
 0x190   :  { %1507 = vpow2.f32 %v752_v5 }
 0x192   :  { %v1859_v8 = vpop.xlane.xlu0 %642 }
 0x193   :  { %v720_v9 = vsel %vm1745_vm7, %v1859_v8, %v1857_v7 }
 0x194   :  { %v736_v10 = vsub.f32 %v608_v38, %v720_v9 }
 0x196   :  { %v754_v11 = vmul.f32 1.442695, %v736_v10  ;;  %v1865_v12 = vpop.xlane.xlu0 %692 }
 0x197   :  { %v721_v13 = vsel %vm1779_vm10, %v1855_v6, %v1865_v12  ;;  %vm897_vm8 = vcmp.gt.f32.partialorder %v1865_v12, -1e+29 }
 0x198   :  { %1509 = vpow2.f32 %v754_v11  ;;  %v737_v14 = vsub.f32 %v609_v44, %v721_v13 }
 0x19a   :  { %v756_v16 = vmul.f32 1.442695, %v737_v14 }
 0x19b   :  { %v1506_v17 = vpop.eup %1505 }
 0x19c   :  { %1511 = vpow2.f32 %v756_v16  ;;  %v782_v18 = vsel %vm1732_vm2, %v1506_v17, 0.0  ;;  %v830_v22 = vsel %vm1693_vm13, %v1506_v17, 0.0  ;;  %vm895_vm13 = vcmp.gt.f32.partialorder %v1849_v1, -1e+29 }
 0x19d   :  { %v1508_v20 = vpop.eup %1507  ;;  %798 = vadd.xlane.f32.xlu1 %v782_v18  ;;  %vm1263_vm1 = vmand %vm879_vm0, %vm895_vm13  ;;  %vm880_vm2 = vcmp.gt.f32.partialorder %v1859_v8, -1e+29 }
 0x19e   :  { %v783_v21 = vsel %vm1701_vm14, %v1508_v20, 0.0  ;;  %v831_v23 = vsel %vm1707_vm15, %v1508_v20, 0.0  ;;  %vm1262_vm15 = vmand %vm878_vm4, %vm894_vm11 }
 0x19f   :  { %800 = vadd.xlane.f32.xlu0 %v783_v21 }
 0x1a1   :  { %846 = vadd.xlane.f32.xlu1 %v830_v22 }
 0x1a3   :  { %848 = vadd.xlane.f32.xlu0 %v831_v23 }
 0x1a5   :  { %v1510_v25 = vpop.eup %1509 }
 0x1a6   :  { %v784_v26 = vsel %vm1745_vm7, %v1510_v25, 0.0  ;;  %v832_v60 = vsel %vm1757_vm5, %v1510_v25, 0.0  ;;  %vm896_vm7 = vcmp.gt.f32.partialorder %v1857_v7, -1e+29 }
 0x1a7   :  { %802 = vadd.xlane.f32.xlu1 %v784_v26  ;;  %vm1264_vm5 = vmand %vm880_vm2, %vm896_vm7 }
 0x1a9   :  { %v1512_v15 = vpop.eup %1511 }
 0x1aa   :  { %v785_v27 = vsel %vm1779_vm10, %v1512_v15, 0.0  ;;  %v833_v52 = vsel %vm1789_vm6, %v1512_v15, 0.0  ;;  %vm881_vm10 = vcmp.gt.f32.partialorder %v1855_v6, -1e+29 }
 0x1ab   :  { %804 = vadd.xlane.f32.xlu0 %v785_v27  ;;  %850 = vadd.xlane.f32.xlu1 %v832_v60  ;;  %vm1265_vm6 = vmand %vm881_vm10, %vm897_vm8 }
 0x1af   :  { %852 = vadd.xlane.f32.xlu0 %v833_v52 }
 0x1ba   :  { %v1448_v19 = vpop.f32.mrf.mxu0 }
 0x1bc   :  { %v150_v35 = vpop.f32.mrf.mxu0 }
 0x1be   :  { %v1451_v37 = vpop.f32.mrf.mxu0 }
 0x1c0   :  { %v1454_v63 = vpop.f32.mrf.mxu1  ;;  %v160_v38 = vpop.f32.mrf.mxu0 }
 0x1c2   :  { %v170_v30 = vpop.f32.mrf.mxu1 }
 0x1c4   :  { %v1457_v31 = vpop.f32.mrf.mxu1 }
 0x1c6   :  { %v180_v32 = vpop.f32.mrf.mxu1 }
 0x1c8   :  { %v1460_v33 = vpop.f32.mrf.mxu1 }
 0x1ca   :  { %v190_v36 = vpop.f32.mrf.mxu1 }
 0x1cc   :  { %v1463_v34 = vpop.f32.mrf.mxu1 }
 0x1ce   :  { %v200_v29 = vpop.f32.mrf.mxu1 }
 0x226   :  { %v799_v39 = vpop.xlane.xlu1 %798 }
 0x227   :  { %1513 = vlog2.f32 %v799_v39 }
 0x228   :  { %v801_v40 = vpop.xlane.xlu0 %800 }
 0x229   :  { %1515 = vlog2.f32 %v801_v40 }
 0x22a   :  { %v847_v41 = vpop.xlane.xlu1 %846 }
 0x22b   :  { %1517 = vlog2.f32 %v847_v41 }
 0x22c   :  { %v849_v42 = vpop.xlane.xlu0 %848 }
 0x22d   :  { %1519 = vlog2.f32 %v849_v42 }
 0x230   :  { %v803_v43 = vpop.xlane.xlu1 %802 }
 0x231   :  { %1521 = vlog2.f32 %v803_v43 }
 0x234   :  { %v1514_v44 = vpop.eup %1513  ;;  %v805_v28 = vpop.xlane.xlu0 %804 }
 0x235   :  { %v851_v45 = vpop.xlane.xlu1 %850  ;;  %1523 = vlog2.f32 %v805_v28  ;;  %v911_v47 = vmul.f32 0.6931472, %v1514_v44 }
 0x236   :  { %v1516_v46 = vpop.eup %1515  ;;  %1525 = vlog2.f32 %v851_v45 }
 0x237   :  { %v913_v50 = vmul.f32 0.6931472, %v1516_v46  ;;  %v942_v54 = vadd.f32 %v911_v47, %v1841_v59 }
 0x238   :  { %v1518_v48 = vpop.eup %1517  ;;  %v853_v49 = vpop.xlane.xlu0 %852 }
 0x239   :  { %v959_v51 = vmul.f32 0.6931472, %v1518_v48  ;;  %1527 = vlog2.f32 %v853_v49  ;;  %v943_v57 = vadd.f32 %v913_v50, %v1839_v58 }
 0x23a   :  { %v1520_v53 = vpop.eup %1519 }
 0x23b   :  { %v990_v55 = vadd.f32 %v959_v51, %v1843_v61  ;;  %v961_v56 = vmul.f32 0.6931472, %v1520_v53 }
 0x23d   :  { %v1890_v62 = vadd.f32 %v990_v55, %v942_v54  ;;  %v991_v0 = vadd.f32 %v961_v56, %v1849_v1 }
 0x23e   :  { %v1522_v2 = vpop.eup %1521 }
 0x23f   :  { %v1038_v3 = vand.u32 2147483647, %v1890_v62  ;;  %v1894_v4 = vadd.f32 %v991_v0, %v943_v57  ;;  %v915_v11 = vmul.f32 0.6931472, %v1522_v2  ;;  %v1022_v48 = vmax.f32 %v1890_v62, 0.0 }
 0x241   :  { %v1054_v5 = vsub.f32 0.0, %v1038_v3  ;;  %v1039_v9 = vand.u32 2147483647, %v1894_v4  ;;  %v944_v22 = vadd.f32 %v915_v11, %v1859_v8  ;;  %v1023_v54 = vmax.f32 %v1894_v4, 0.0 }
 0x242   :  { %v1524_v10 = vpop.eup %1523 }
 0x243   :  { %v1526_v13 = vpop.eup %1525  ;;  %v1070_v14 = vmul.f32 1.442695, %v1054_v5  ;;  %v1055_v16 = vsub.f32 0.0, %v1039_v9  ;;  %v917_v20 = vmul.f32 0.6931472, %v1524_v10 }
 0x244   :  { %v963_v17 = vmul.f32 0.6931472, %v1526_v13 }
 0x245   :  { %1529 = vpow2.f32 %v1070_v14  ;;  %v1072_v18 = vmul.f32 1.442695, %v1055_v16  ;;  %v945_v15 = vadd.f32 %v917_v20, %v1855_v6 }
 0x246   :  { %v1528_v21 = vpop.eup %1527  ;;  %v992_v23 = vadd.f32 %v963_v17, %v1857_v7 }
 0x247   :  { %1531 = vpow2.f32 %v1072_v18  ;;  %v965_v25 = vmul.f32 0.6931472, %v1528_v21 }
 0x248   :  { %v1899_v26 = vadd.f32 %v992_v23, %v944_v22 }
 0x249   :  { %v993_v27 = vadd.f32 %v965_v25, %v1865_v12 }
 0x24a   :  { %v1040_v60 = vand.u32 2147483647, %v1899_v26  ;;  %v1024_v59 = vmax.f32 %v1899_v26, 0.0 }
 0x24b   :  { %v1904_v52 = vadd.f32 %v993_v27, %v945_v15 }
 0x24c   :  { %v1056_v63 = vsub.f32 0.0, %v1040_v60 }
 0x24d   :  { %v1041_v30 = vand.u32 2147483647, %v1904_v52  ;;  %v1025_v17 = vmax.f32 %v1904_v52, 0.0 }
 0x24e   :  { %v1074_v31 = vmul.f32 1.442695, %v1056_v63 }
 0x24f   :  { %v1057_v32 = vsub.f32 0.0, %v1041_v30 }
 0x250   :  { %1533 = vpow2.f32 %v1074_v31 }
 0x251   :  { %v1076_v19 = vmul.f32 1.442695, %v1057_v32 }
 0x252   :  { %v1530_v33 = vpop.eup %1529 }
 0x253   :  { %v1102_v35 = vadd.f32 1.0, %v1530_v33  ;;  %1535 = vpow2.f32 %v1076_v19  ;;  %v1105_v34 = vmul.f32 -0.5, %v1530_v33  ;;  %v1108_v41 = vand.u32 2147483647, %v1530_v33 }
 0x254   :  { %v1532_v36 = vpop.eup %1531 }
 0x255   :  { %1537 = vlog2.f32 %v1102_v35  ;;  %v1111_v37 = vadd.f32 1.0, %v1532_v36  ;;  %v1114_v29 = vmul.f32 -0.5, %v1532_v36  ;;  %v1106_v39 = vadd.f32 1.0, %v1105_v34 }
 0x256   :  { %v1117_v28 = vand.u32 2147483647, %v1532_v36  ;;  %vm1109_vm12 = vcmp.lt.f32.partialorder %v1108_v41, 0.0004427343 }
 0x257   :  { %1539 = vlog2.f32 %v1111_v37  ;;  %v1115_v42 = vadd.f32 1.0, %v1114_v29  ;;  %v1107_v46 = vmul.f32 %v1530_v33, %v1106_v39 }
 0x258   :  { %vm1118_vm14 = vcmp.lt.f32.partialorder %v1117_v28, 0.0004427343 }
 0x259   :  { %v1116_v51 = vmul.f32 %v1532_v36, %v1115_v42 }
 0x25d   :  { %v1534_v38 = vpop.eup %1533 }
 0x25e   :  { %v1120_v24 = vadd.f32 1.0, %v1534_v38  ;;  %v1123_v55 = vmul.f32 -0.5, %v1534_v38  ;;  %v1126_v2 = vand.u32 2147483647, %v1534_v38 }
 0x260   :  { %v1536_v40 = vpop.eup %1535  ;;  %1541 = vlog2.f32 %v1120_v24  ;;  %v1124_v0 = vadd.f32 1.0, %v1123_v55  ;;  %vm1127_vm3 = vcmp.lt.f32.partialorder %v1126_v2, 0.0004427343 }
 0x261   :  { %v1129_v43 = vadd.f32 1.0, %v1536_v40  ;;  %v1132_v62 = vmul.f32 -0.5, %v1536_v40  ;;  %v1135_v10 = vand.u32 2147483647, %v1536_v40 }
 0x262   :  { %v1538_v44 = vpop.eup %1537  ;;  %v1125_v9 = vmul.f32 %v1534_v38, %v1124_v0 }
 0x263   :  { %v1104_v45 = vmul.f32 0.6931472, %v1538_v44  ;;  %1543 = vlog2.f32 %v1129_v43  ;;  %v1133_v5 = vadd.f32 1.0, %v1132_v62  ;;  %vm1136_vm9 = vcmp.lt.f32.partialorder %v1135_v10, 0.0004427343 }
 0x264   :  { %v1540_v47 = vpop.eup %1539 }
 0x265   :  { %v1110_v49 = vsel %vm1109_vm12, %v1107_v46, %v1104_v45  ;;  %v1113_v50 = vmul.f32 0.6931472, %v1540_v47  ;;  %v1134_v16 = vmul.f32 %v1536_v40, %v1133_v5 }
 0x266   :  { %v1246_v53 = vadd.f32 %v1110_v49, %v1022_v48 }
 0x267   :  { %v1119_v56 = vsel %vm1118_vm14, %v1116_v51, %v1113_v50 }
 0x268   :  { %v1294_v61 = vsel %vm1262_vm15, %v1246_v53, 0.0  ;;  %v1247_v57 = vadd.f32 %v1119_v56, %v1023_v54 }
 0x269   :  { %1310 = vst [vmem:[#allocation5] sm:$0xff] %v1294_v61 }
 0x26a   :  { %v1295_v1 = vsel %vm1263_vm1, %v1247_v57, 0.0 }
 0x26b   :  { %1311 = vst [vmem:[#allocation5 + $0x8] sm:$0xff] %v1295_v1 }
 0x26d   :  { %v1542_v3 = vpop.eup %1541 }
 0x26e   :  { %v1122_v4 = vmul.f32 0.6931472, %v1542_v3 }
 0x270   :  { %v1544_v58 = vpop.eup %1543  ;;  %v1128_v11 = vsel %vm1127_vm3, %v1125_v9, %v1122_v4 }
 0x271   :  { %v1248_v13 = vadd.f32 %v1128_v11, %v1024_v59  ;;  %v1131_v14 = vmul.f32 0.6931472, %v1544_v58 }
 0x273   :  { %v1296_v18 = vsel %vm1264_vm5, %v1248_v13, 0.0  ;;  %v1137_v8 = vsel %vm1136_vm9, %v1134_v16, %v1131_v14 }
 0x274   :  { %1312 = vst [vmem:[#allocation5 + $0x10] sm:$0xff] %v1296_v18  ;;  %v1249_v20 = vadd.f32 %v1137_v8, %v1025_v17 }
 0x276   :  { %v1297_v7 = vsel %vm1265_vm6, %v1249_v20, 0.0 }
 0x277   :  { %1313 = vst [vmem:[#allocation5 + $0x18] sm:$0xff] %v1297_v7 }
 0x278   :  { %1576 = shalt.err (!%p1573_p9)
}
 0x279   :  { %1337 = dma.vmem_to_hbm [thread:$0]  %s1332_s9, 2048, %s1931_s4, [#allocation4], %s1590_s18, %s1590_s18, %s1591_s19  }
 0x27a   :  { %1587 = dma.done.wait [#allocation4], 2048  }
 0x27b   :  { %1588 = vsyncadd [#allocation4], 4294965248 }
 0x27c   :  { %1341 = vsyncpa [#allocation3], 1 }
 0x27d   :  { %1342 = vsyncpa [#allocation4], 1 }

</bundles_post_ra>
